<compile_context>
chip_gen: v7x
topology: tpu7x:2x2x1
jax: 0.10.0
libtpu: 0.0.40
codegen_flags: <defaults>
</compile_context>

<pallas_src>
import jax
import jax.numpy as jnp
from jax.experimental import pallas as pl
from jax.experimental import pallas  # noqa: F401  (pl is the alias used)

# Number of independent partial accumulators inside the kernel.
# 2 is right for v6e/v7x (2 MXUs); use 4 on v5e (4 MXUs).
_N_ACC = 2


def _round_up(a, b):
    return (a + b - 1) // b * b


def _make_relu_conv_kernel(Wp, Sout, n_k=3, n_acc=_N_ACC):
    """Fused 3x3-conv kernel: 9 shifted matmuls over a pre-ReLU'd padded slab."""

    def kernel(xp_ref, w_ref, o_ref):
        # xp_ref: [Cin, Lin]      bf16, ReLU'd + zero-padded input, spatial flat
        # w_ref : [9, Cout, Cin]  bf16, per-tap weights
        # o_ref : [Cout, Sout]    f32, lane-dense output (Sout % 128 == 0)
        accs = [jnp.zeros(o_ref.shape, jnp.float32) for _ in range(n_acc)]
        for kh in range(n_k):
            for kw in range(n_k):
                t = kh * n_k + kw
                d = kh * Wp + kw  # shift of this tap in the flattened padded grid
                p = xp_ref[:, d:d + Sout]  # bf16 [Cin, Sout] (already ReLU'd)
                # Round-robin over independent accumulators -> independent
                # matmul chains the compiler can spread across MXUs.
                # (On v7x these should accumulate in-place in the MRB.)
                accs[t % n_acc] = accs[t % n_acc] + jnp.dot(
                    w_ref[t], p, preferred_element_type=jnp.float32
                )
        acc = accs[0]
        for a in accs[1:]:
            acc = acc + a
        o_ref[...] = acc

    return kernel


def prepare_weight(weight):
    """PyTorch OIHW [Cout, Cin, 3, 3] f32 -> [9, Cout, Cin] bf16.

    Call once at parameter-load time (weights are static across forwards).
    """
    Cout, Cin, KH, KW = weight.shape
    assert (KH, KW) == (3, 3)
    w9 = jnp.transpose(weight, (2, 3, 0, 1)).reshape(KH * KW, Cout, Cin)
    return w9.astype(jnp.bfloat16)


@jax.jit
def relu_conv2d_3x3(x_nchw, w9):
    """ReLU followed by 3x3 conv, stride 1, pad 1, no bias.

    x_nchw: [1, Cin, H, W] float32   (NCHW, matching PyTorch)
    w9    : [9, Cout, Cin] bfloat16  (from prepare_weight)
    returns: [1, Cout, H, W] float32 (NCHW)
    """
    N, Cin, H, W = x_nchw.shape
    assert N == 1  # module spec: batch 1
    _, Cout, _ = w9.shape

    Wp = W + 2
    # Output columns q = i*Wp + j (i<H, j<W), computed for a lane-dense range.
    Sout = _round_up(H * Wp, 128)                 # 224 -> 256
    # The last tap (kh=kw=2) reads padded column (Sout-1) + 2*Wp + 2; the slab
    # MUST be at least that long -- VMEM refs have no runtime bounds check.
    Lin_min = Sout + 2 * Wp + 2                   # 290
    Lin = _round_up(Lin_min, 128)                 # 384 (lane-aligned)
    while Lin % Wp != 0:                          # keep Lin a whole # of rows
        Lin += 128
    assert Lin >= Lin_min and Lin % Wp == 0
    rows = Lin // Wp                              # 24 padded rows total
    pad_bottom = rows - H - 1                     # 9

    # ONE fused pass: ReLU + bf16 cast + zero-pad; the reshape to [Cin, Lin]
    # is a free contiguous view (no extra HBM traffic / launches).
    xr = jnp.maximum(x_nchw[0], 0.0).astype(jnp.bfloat16)          # [Cin, H, W]
    xp_flat = jnp.pad(xr, ((0, 0), (1, pad_bottom), (1, 1))).reshape(Cin, Lin)

    flops = 2 * 9 * Cout * Cin * Sout
    bytes_accessed = Cin * Lin * 2 + 9 * Cout * Cin * 2 + Cout * Sout * 4

    out2d = pl.pallas_call(
        _make_relu_conv_kernel(Wp, Sout),
        out_shape=jax.ShapeDtypeStruct((Cout, Sout), jnp.float32),
        in_specs=[
            pl.BlockSpec((Cin, Lin), lambda: (0, 0)),
            pl.BlockSpec((9, Cout, Cin), lambda: (0, 0, 0)),
        ],
        out_specs=pl.BlockSpec((Cout, Sout), lambda: (0, 0)),
        cost_estimate=pl.CostEstimate(
            flops=flops, transcendentals=0, bytes_accessed=bytes_accessed
        ),
    )(xp_flat, w9)

    # [Cout, Sout] -> valid pixels -> (1, Cout, H, W); no transpose needed.
    # (Stays inside this jit so XLA fuses the crop with the kernel output.)
    y = out2d[:, : H * Wp].reshape(Cout, H, Wp)[:, :, :W]
    return y[None]


if __name__ == "__main__":
    key = jax.random.PRNGKey(0)
    kx, kw = jax.random.split(key)

    # Shapes implied by the module's forward: x271 is [1, 192, 14, 14].
    x = jax.random.normal(kx, (1, 192, 14, 14), dtype=jnp.float32)
    # Deterministic synthetic conv weight (Conv2d(192, 48, 3x3, bias=False)).
    weight = jax.random.normal(kw, (48, 192, 3, 3), dtype=jnp.float32) * 0.05

    w9 = prepare_weight(weight)       # one-time weight repack (not per-call)
    y = relu_conv2d_3x3(x, w9)
    y = jax.block_until_ready(y)
    assert y.shape == (1, 48, 14, 14)

    # Apples-to-apples reference: same bf16 operand rounding, f32 accumulation.
    ref_bf16 = jax.lax.conv_general_dilated(
        jnp.maximum(x, 0.0).astype(jnp.bfloat16),
        weight.astype(jnp.bfloat16),
        window_strides=(1, 1), padding=((1, 1), (1, 1)),
        dimension_numbers=("NCHW", "OIHW", "NCHW"),
        preferred_element_type=jnp.float32,
    )
    assert jnp.allclose(y, ref_bf16, atol=5e-3, rtol=5e-3)

    # Full-f32 reference: difference is only bf16 operand rounding (~0.4% rel).
    ref_f32 = jax.lax.conv_general_dilated(
        jnp.maximum(x, 0.0), weight,
        window_strides=(1, 1), padding=((1, 1), (1, 1)),
        dimension_numbers=("NCHW", "OIHW", "NCHW"),
    )
    assert jnp.allclose(y, ref_f32, atol=3e-2, rtol=3e-2)

    print("KERNEL_OK")
</pallas_src>

<mosaic_0001>
module attributes {stable_mosaic.version = 11 : i64} {
  func.func @kernel(%arg0: memref<192x384xbf16, #tpu.memory_space<vmem>>, %arg1: memref<9x48x192xbf16, #tpu.memory_space<vmem>>, %arg2: memref<48x256xf32, #tpu.memory_space<vmem>>) attributes {dimension_semantics = [], scalar_prefetch = 0 : i64, scratch_operands = 0 : i64, tpu.core_type = #tpu.core_type<tc>} {
    %cst = arith.constant 0.000000e+00 : f32
    %0 = vector.broadcast %cst : f32 to vector<48x256xf32>
    %cst_0 = arith.constant 0.000000e+00 : f32
    %1 = vector.broadcast %cst_0 : f32 to vector<48x256xf32>
    %c0 = arith.constant 0 : index
    %c0_1 = arith.constant 0 : index
    %2 = vector.load %arg0[%c0, %c0_1] : memref<192x384xbf16, #tpu.memory_space<vmem>>, vector<192x256xbf16>
    %c0_2 = arith.constant 0 : index
    %c0_3 = arith.constant 0 : index
    %c0_4 = arith.constant 0 : index
    %3 = vector.load %arg1[%c0_2, %c0_3, %c0_4] : memref<9x48x192xbf16, #tpu.memory_space<vmem>>, vector<1x48x192xbf16>
    %4 = vector.shape_cast %3 : vector<1x48x192xbf16> to vector<48x192xbf16>
    %cst_5 = arith.constant dense<0.000000e+00> : vector<48x256xf32>
    %5 = tpu.matmul %4, %2, %cst_5 {dimension_numbers = #tpu.dot_dimension_numbers<[1], [0], [0], [1], [0, 0, 1, 1], [], []>} : vector<48x192xbf16>, vector<192x256xbf16>, vector<48x256xf32> -> vector<48x256xf32>
    %6 = arith.addf %0, %5 : vector<48x256xf32>
    %c0_6 = arith.constant 0 : index
    %c1 = arith.constant 1 : index
    %7 = vector.load %arg0[%c0_6, %c1] : memref<192x384xbf16, #tpu.memory_space<vmem>>, vector<192x256xbf16>
    %c1_7 = arith.constant 1 : index
    %c0_8 = arith.constant 0 : index
    %c0_9 = arith.constant 0 : index
    %8 = vector.load %arg1[%c1_7, %c0_8, %c0_9] : memref<9x48x192xbf16, #tpu.memory_space<vmem>>, vector<1x48x192xbf16>
    %9 = vector.shape_cast %8 : vector<1x48x192xbf16> to vector<48x192xbf16>
    %cst_10 = arith.constant dense<0.000000e+00> : vector<48x256xf32>
    %10 = tpu.matmul %9, %7, %cst_10 {dimension_numbers = #tpu.dot_dimension_numbers<[1], [0], [0], [1], [0, 0, 1, 1], [], []>} : vector<48x192xbf16>, vector<192x256xbf16>, vector<48x256xf32> -> vector<48x256xf32>
    %11 = arith.addf %1, %10 : vector<48x256xf32>
    %c0_11 = arith.constant 0 : index
    %c2 = arith.constant 2 : index
    %12 = vector.load %arg0[%c0_11, %c2] : memref<192x384xbf16, #tpu.memory_space<vmem>>, vector<192x256xbf16>
    %c2_12 = arith.constant 2 : index
    %c0_13 = arith.constant 0 : index
    %c0_14 = arith.constant 0 : index
    %13 = vector.load %arg1[%c2_12, %c0_13, %c0_14] : memref<9x48x192xbf16, #tpu.memory_space<vmem>>, vector<1x48x192xbf16>
    %14 = vector.shape_cast %13 : vector<1x48x192xbf16> to vector<48x192xbf16>
    %cst_15 = arith.constant dense<0.000000e+00> : vector<48x256xf32>
    %15 = tpu.matmul %14, %12, %cst_15 {dimension_numbers = #tpu.dot_dimension_numbers<[1], [0], [0], [1], [0, 0, 1, 1], [], []>} : vector<48x192xbf16>, vector<192x256xbf16>, vector<48x256xf32> -> vector<48x256xf32>
    %16 = arith.addf %6, %15 : vector<48x256xf32>
    %c0_16 = arith.constant 0 : index
    %c16 = arith.constant 16 : index
    %17 = vector.load %arg0[%c0_16, %c16] : memref<192x384xbf16, #tpu.memory_space<vmem>>, vector<192x256xbf16>
    %c3 = arith.constant 3 : index
    %c0_17 = arith.constant 0 : index
    %c0_18 = arith.constant 0 : index
    %18 = vector.load %arg1[%c3, %c0_17, %c0_18] : memref<9x48x192xbf16, #tpu.memory_space<vmem>>, vector<1x48x192xbf16>
    %19 = vector.shape_cast %18 : vector<1x48x192xbf16> to vector<48x192xbf16>
    %cst_19 = arith.constant dense<0.000000e+00> : vector<48x256xf32>
    %20 = tpu.matmul %19, %17, %cst_19 {dimension_numbers = #tpu.dot_dimension_numbers<[1], [0], [0], [1], [0, 0, 1, 1], [], []>} : vector<48x192xbf16>, vector<192x256xbf16>, vector<48x256xf32> -> vector<48x256xf32>
    %21 = arith.addf %11, %20 : vector<48x256xf32>
    %c0_20 = arith.constant 0 : index
    %c17 = arith.constant 17 : index
    %22 = vector.load %arg0[%c0_20, %c17] : memref<192x384xbf16, #tpu.memory_space<vmem>>, vector<192x256xbf16>
    %c4 = arith.constant 4 : index
    %c0_21 = arith.constant 0 : index
    %c0_22 = arith.constant 0 : index
    %23 = vector.load %arg1[%c4, %c0_21, %c0_22] : memref<9x48x192xbf16, #tpu.memory_space<vmem>>, vector<1x48x192xbf16>
    %24 = vector.shape_cast %23 : vector<1x48x192xbf16> to vector<48x192xbf16>
    %cst_23 = arith.constant dense<0.000000e+00> : vector<48x256xf32>
    %25 = tpu.matmul %24, %22, %cst_23 {dimension_numbers = #tpu.dot_dimension_numbers<[1], [0], [0], [1], [0, 0, 1, 1], [], []>} : vector<48x192xbf16>, vector<192x256xbf16>, vector<48x256xf32> -> vector<48x256xf32>
    %26 = arith.addf %16, %25 : vector<48x256xf32>
    %c0_24 = arith.constant 0 : index
    %c18 = arith.constant 18 : index
    %27 = vector.load %arg0[%c0_24, %c18] : memref<192x384xbf16, #tpu.memory_space<vmem>>, vector<192x256xbf16>
    %c5 = arith.constant 5 : index
    %c0_25 = arith.constant 0 : index
    %c0_26 = arith.constant 0 : index
    %28 = vector.load %arg1[%c5, %c0_25, %c0_26] : memref<9x48x192xbf16, #tpu.memory_space<vmem>>, vector<1x48x192xbf16>
    %29 = vector.shape_cast %28 : vector<1x48x192xbf16> to vector<48x192xbf16>
    %cst_27 = arith.constant dense<0.000000e+00> : vector<48x256xf32>
    %30 = tpu.matmul %29, %27, %cst_27 {dimension_numbers = #tpu.dot_dimension_numbers<[1], [0], [0], [1], [0, 0, 1, 1], [], []>} : vector<48x192xbf16>, vector<192x256xbf16>, vector<48x256xf32> -> vector<48x256xf32>
    %31 = arith.addf %21, %30 : vector<48x256xf32>
    %c0_28 = arith.constant 0 : index
    %c32 = arith.constant 32 : index
    %32 = vector.load %arg0[%c0_28, %c32] : memref<192x384xbf16, #tpu.memory_space<vmem>>, vector<192x256xbf16>
    %c6 = arith.constant 6 : index
    %c0_29 = arith.constant 0 : index
    %c0_30 = arith.constant 0 : index
    %33 = vector.load %arg1[%c6, %c0_29, %c0_30] : memref<9x48x192xbf16, #tpu.memory_space<vmem>>, vector<1x48x192xbf16>
    %34 = vector.shape_cast %33 : vector<1x48x192xbf16> to vector<48x192xbf16>
    %cst_31 = arith.constant dense<0.000000e+00> : vector<48x256xf32>
    %35 = tpu.matmul %34, %32, %cst_31 {dimension_numbers = #tpu.dot_dimension_numbers<[1], [0], [0], [1], [0, 0, 1, 1], [], []>} : vector<48x192xbf16>, vector<192x256xbf16>, vector<48x256xf32> -> vector<48x256xf32>
    %36 = arith.addf %26, %35 : vector<48x256xf32>
    %c0_32 = arith.constant 0 : index
    %c33 = arith.constant 33 : index
    %37 = vector.load %arg0[%c0_32, %c33] : memref<192x384xbf16, #tpu.memory_space<vmem>>, vector<192x256xbf16>
    %c7 = arith.constant 7 : index
    %c0_33 = arith.constant 0 : index
    %c0_34 = arith.constant 0 : index
    %38 = vector.load %arg1[%c7, %c0_33, %c0_34] : memref<9x48x192xbf16, #tpu.memory_space<vmem>>, vector<1x48x192xbf16>
    %39 = vector.shape_cast %38 : vector<1x48x192xbf16> to vector<48x192xbf16>
    %cst_35 = arith.constant dense<0.000000e+00> : vector<48x256xf32>
    %40 = tpu.matmul %39, %37, %cst_35 {dimension_numbers = #tpu.dot_dimension_numbers<[1], [0], [0], [1], [0, 0, 1, 1], [], []>} : vector<48x192xbf16>, vector<192x256xbf16>, vector<48x256xf32> -> vector<48x256xf32>
    %41 = arith.addf %31, %40 : vector<48x256xf32>
    %c0_36 = arith.constant 0 : index
    %c34 = arith.constant 34 : index
    %42 = vector.load %arg0[%c0_36, %c34] : memref<192x384xbf16, #tpu.memory_space<vmem>>, vector<192x256xbf16>
    %c8 = arith.constant 8 : index
    %c0_37 = arith.constant 0 : index
    %c0_38 = arith.constant 0 : index
    %43 = vector.load %arg1[%c8, %c0_37, %c0_38] : memref<9x48x192xbf16, #tpu.memory_space<vmem>>, vector<1x48x192xbf16>
    %44 = vector.shape_cast %43 : vector<1x48x192xbf16> to vector<48x192xbf16>
    %cst_39 = arith.constant dense<0.000000e+00> : vector<48x256xf32>
    %45 = tpu.matmul %44, %42, %cst_39 {dimension_numbers = #tpu.dot_dimension_numbers<[1], [0], [0], [1], [0, 0, 1, 1], [], []>} : vector<48x192xbf16>, vector<192x256xbf16>, vector<48x256xf32> -> vector<48x256xf32>
    %46 = arith.addf %36, %45 : vector<48x256xf32>
    %47 = arith.addf %46, %41 : vector<48x256xf32>
    %c0_40 = arith.constant 0 : index
    %c0_41 = arith.constant 0 : index
    %48 = vector.load %arg2[%c0_40, %c0_41] : memref<48x256xf32, #tpu.memory_space<vmem>>, vector<48x256xf32>
    tpu.vector_store %arg2[%c0_40, %c0_41], %47 {strides = array<i32>} : memref<48x256xf32, #tpu.memory_space<vmem>>, vector<48x256xf32>,
    return
  }
}

</mosaic_0001>

<bundles_post_ra>
// kernel: relu_conv2d_3x3.1
= control target key start
LH: loop header
LB: loop body
LE: loop exit
PB: predicated region body
PF: predicated region fallthrough
CT: control target
= control target key end

     0   :  { %s2852_s13 = smov 126   ;;  %s2853_s16 = smov 111   ;;  %vm359_vm0 = vcmask 1031168   ;;  %vm408_vm1 = vcmask 523264   ;;  %vm1253_vm2 = vcmask 908288   ;;  %vm1492_vm3 = vcmask 900096   ;;  %s4252_s0 = inlined_call_operand.vmem [shape: bf16[192,384], index: 0, kind: input, shape index: {}]   ;;  %s4253_s1 = inlined_call_operand.vmem [shape: bf16[9,48,192], index: 1, kind: input, shape index: {}]   ;;  %s4254_s2 = inlined_call_operand.vmem [shape: f32[48,256], index: 2, kind: output, shape index: {}]  }
   0x1   :  { %v2878_v0 = vld [vmem:[%s4252_s0 + $0x8] ss:$12 sps:$4 sm:$0xff]   ;;  %v2883_v1 = vld [vmem:[%s4252_s0] ss:$12 sps:$4 sm:$0xff]   ;;  %v2890_v2 = vld [vmem:[%s4252_s0 + $0x18] ss:$12 sps:$4 sm:$0xff]  }
   0x2   :  { %291 = vrot.lane.b32.xlu1 %v2878_v0, %s2852_s13  ;;  %287 = vrot.lane.b32.xlu0 %v2883_v1, %s2852_s13  ;;  %v2897_v3 = vld [vmem:[%s4252_s0 + $0x4] ss:$12 sps:$4 sm:$0xff]   ;;  %v2904_v4 = vld [vmem:[%s4252_s0 + $0x20] ss:$12 sps:$4 sm:$0xff]   ;;  %s2855_s5 = smov 112   ;;  %s2856_s6 = smov 96  }
   0x3   :  { %v2911_v5 = vld [vmem:[%s4252_s0 + $0x1c] ss:$12 sps:$4 sm:$0xff]   ;;  %v2918_v6 = vld [vmem:[%s4252_s0 + $0x34] ss:$12 sps:$4 sm:$0xff]   ;;  %v2939_v9 = vld [vmem:[%s4252_s0 + $0x38] ss:$12 sps:$4 sm:$0xff]  }
   0x4   :  { %v2925_v7 = vld [vmem:[%s4252_s0 + $0x30] ss:$12 sps:$4 sm:$0xff]   ;;  %v2932_v8 = vld [vmem:[%s4252_s0 + $0x48] ss:$12 sps:$4 sm:$0xff]   ;;  %v2953_v11 = vld [vmem:[%s4252_s0 + $0x4c] ss:$12 sps:$4 sm:$0xff]  }
   0x5   :  { %v2946_v10 = vld [vmem:[%s4252_s0 + $0x50] ss:$12 sps:$4 sm:$0xff]   ;;  %v2967_v13 = vld [vmem:[%s4252_s0 + $0x60] ss:$12 sps:$4 sm:$0xff]   ;;  %v2974_v14 = vld [vmem:[%s4252_s0 + $0x78] ss:$12 sps:$4 sm:$0xff]  }
   0x6   :  { %293 = vrot.lane.b32.xlu1 %v2890_v2, %s2852_s13  ;;  %289 = vrot.lane.b32.xlu0 %v2897_v3, %s2852_s13  ;;  %v2960_v12 = vld [vmem:[%s4252_s0 + $0x64] ss:$12 sps:$4 sm:$0xff]   ;;  %v2981_v15 = vld [vmem:[%s4252_s0 + $0x68] ss:$12 sps:$4 sm:$0xff]   ;;  %vm806_vm4 = vcmask 916480   ;;  %vm1731_vm5 = vcmask 785408  }
   0x7   :  { %v2988_v16 = vld [vmem:[%s4252_s0 + $0x80] ss:$12 sps:$4 sm:$0xff]   ;;  %v2995_v17 = vld [vmem:[%s4252_s0 + $0x7c] ss:$12 sps:$4 sm:$0xff]   ;;  %v3023_v21 = vld [vmem:[%s4252_s0 + $0x98] ss:$12 sps:$4 sm:$0xff]  }
   0x8   :  { %v3002_v18 = vld [vmem:[%s4252_s0 + $0x94] ss:$12 sps:$4 sm:$0xff]   ;;  %v3009_v19 = vld [vmem:[%s4252_s0 + $0x90] ss:$12 sps:$4 sm:$0xff]   ;;  %v3037_v23 = vld [vmem:[%s4252_s0 + $0xac] ss:$12 sps:$4 sm:$0xff]  }
   0x9   :  { %v3016_v20 = vld [vmem:[%s4252_s0 + $0xa8] ss:$12 sps:$4 sm:$0xff]   ;;  %v3030_v22 = vld [vmem:[%s4252_s0 + $0xb0] ss:$12 sps:$4 sm:$0xff]   ;;  %v3051_v25 = vld [vmem:[%s4252_s0 + $0xc0] ss:$12 sps:$4 sm:$0xff]  }
   0xa   :  { %297 = vrot.lane.b32.xlu1 %v2904_v4, %s2852_s13  ;;  %295 = vrot.lane.b32.xlu0 %v2911_v5, %s2852_s13  ;;  %v3044_v24 = vld [vmem:[%s4252_s0 + $0xc4] ss:$12 sps:$4 sm:$0xff]   ;;  %v3065_v27 = vld [vmem:[%s4252_s0 + $0xc8] ss:$12 sps:$4 sm:$0xff]   ;;  %s2857_s9 = smov 127   ;;  %s2858_s19 = smov 95  }
   0xb   :  { %v3058_v26 = vld [vmem:[%s4252_s0 + $0xd8] ss:$12 sps:$4 sm:$0xff]   ;;  %v3072_v28 = vld [vmem:[%s4252_s0 + $0xe0] ss:$12 sps:$4 sm:$0xff]   ;;  %v3079_v29 = vld [vmem:[%s4252_s0 + $0xdc] ss:$12 sps:$4 sm:$0xff]  }
   0xc   :  { %v3134_v30 = vld [vmem:[%s4252_s0 + $0xf8] ss:$12 sps:$4 sm:$0xff]   ;;  %v3141_v31 = vld [vmem:[%s4252_s0 + $0xf4] ss:$12 sps:$4 sm:$0xff]   ;;  %v3154_v32 = vld [vmem:[%s4252_s0 + $0xf0] ss:$12 sps:$4 sm:$0xff]  }
   0xd   :  { %v3161_v35 = vld [vmem:[%s4252_s0 + $0x110] ss:$12 sps:$4 sm:$0xff]   ;;  %v3168_v36 = vld [vmem:[%s4252_s0 + $0x10c] ss:$12 sps:$4 sm:$0xff]   ;;  %v3185_v45 = vld [vmem:[%s4252_s0 + $0x108] ss:$12 sps:$4 sm:$0xff]  }
   0xe   :  { %301 = vrot.lane.b32.xlu1 %v2918_v6, %s2852_s13  ;;  %299 = vrot.lane.b32.xlu0 %v2925_v7, %s2852_s13  ;;  %v2737_v53 = vld [vmem:[%s4253_s1 + $0xc4] ss:$8 sps:$4 sm:$0xff]   ;;  %vm1026_vm6 = vcmask 1039360   ;;  %vm1970_vm7 = vcmask 777216   ;;  %vm2209_vm8 = vcmask 769024  }
   0xf   :  { %2496 = vmatprep.mubr.msk.bf16.mxu0 %vm408_vm1, %v2737_v53  ;;  %v2740_v63 = vld [vmem:[%s4253_s1 + $0x64] ss:$8 sps:$4 sm:$0xff]  }
  0x10   :  { %2424 = vmatprep.mubr.msk.bf16.mxu1 %vm408_vm1, %v2740_v63 }
  0x12   :  { %305 = vrot.lane.b32.xlu1 %v2932_v8, %s2852_s13  ;;  %303 = vrot.lane.b32.xlu0 %v2939_v9, %s2852_s13 }
  0x16   :  { %309 = vrot.lane.b32.xlu1 %v2946_v10, %s2852_s13  ;;  %307 = vrot.lane.b32.xlu0 %v2953_v11, %s2852_s13 }
  0x1a   :  { %313 = vrot.lane.b32.xlu1 %v2960_v12, %s2852_s13  ;;  %311 = vrot.lane.b32.xlu0 %v2967_v13, %s2852_s13 }
  0x1e   :  { %317 = vrot.lane.b32.xlu1 %v2974_v14, %s2852_s13  ;;  %315 = vrot.lane.b32.xlu0 %v2981_v15, %s2852_s13 }
  0x22   :  { %321 = vrot.lane.b32.xlu1 %v2988_v16, %s2852_s13  ;;  %319 = vrot.lane.b32.xlu0 %v2995_v17, %s2852_s13 }
  0x26   :  { %325 = vrot.lane.b32.xlu1 %v3002_v18, %s2852_s13  ;;  %323 = vrot.lane.b32.xlu0 %v3009_v19, %s2852_s13 }
  0x2a   :  { %329 = vrot.lane.b32.xlu1 %v3016_v20, %s2852_s13  ;;  %327 = vrot.lane.b32.xlu0 %v3023_v21, %s2852_s13 }
  0x2e   :  { %333 = vrot.lane.b32.xlu1 %v3030_v22, %s2852_s13  ;;  %331 = vrot.lane.b32.xlu0 %v3037_v23, %s2852_s13 }
  0x32   :  { %337 = vrot.lane.b32.xlu1 %v3044_v24, %s2852_s13  ;;  %335 = vrot.lane.b32.xlu0 %v3051_v25, %s2852_s13 }
  0x36   :  { %341 = vrot.lane.b32.xlu1 %v3058_v26, %s2852_s13  ;;  %339 = vrot.lane.b32.xlu0 %v3065_v27, %s2852_s13 }
  0x3a   :  { %345 = vrot.lane.b32.xlu1 %v3072_v28, %s2852_s13  ;;  %343 = vrot.lane.b32.xlu0 %v3079_v29, %s2852_s13 }
  0x3e   :  { %1185 = vrot.lane.b32.xlu1 %v2878_v0, %s2853_s16  ;;  %1183 = vrot.lane.b32.xlu0 %v2897_v3, %s2853_s16 }
  0x42   :  { %1189 = vrot.lane.b32.xlu1 %v2911_v5, %s2853_s16  ;;  %1181 = vrot.lane.b32.xlu0 %v2883_v1, %s2853_s16 }
  0x46   :  { %1187 = vrot.lane.b32.xlu1 %v2890_v2, %s2853_s16  ;;  %1191 = vrot.lane.b32.xlu0 %v2904_v4, %s2853_s16 }
  0x4a   :  { %1197 = vrot.lane.b32.xlu1 %v2939_v9, %s2853_s16  ;;  %1195 = vrot.lane.b32.xlu0 %v2918_v6, %s2853_s16 }
  0x4e   :  { %1201 = vrot.lane.b32.xlu1 %v2953_v11, %s2853_s16  ;;  %1193 = vrot.lane.b32.xlu0 %v2925_v7, %s2853_s16 }
  0x52   :  { %1199 = vrot.lane.b32.xlu1 %v2932_v8, %s2853_s16  ;;  %1203 = vrot.lane.b32.xlu0 %v2946_v10, %s2853_s16 }
  0x56   :  { %1209 = vrot.lane.b32.xlu1 %v2981_v15, %s2853_s16  ;;  %1207 = vrot.lane.b32.xlu0 %v2960_v12, %s2853_s16 }
  0x5a   :  { %1213 = vrot.lane.b32.xlu1 %v2995_v17, %s2853_s16  ;;  %1205 = vrot.lane.b32.xlu0 %v2967_v13, %s2853_s16 }
  0x5e   :  { %1211 = vrot.lane.b32.xlu1 %v2974_v14, %s2853_s16  ;;  %1215 = vrot.lane.b32.xlu0 %v2988_v16, %s2853_s16 }
  0x62   :  { %1221 = vrot.lane.b32.xlu1 %v3023_v21, %s2853_s16  ;;  %1219 = vrot.lane.b32.xlu0 %v3002_v18, %s2853_s16 }
  0x66   :  { %1225 = vrot.lane.b32.xlu1 %v3037_v23, %s2853_s16  ;;  %1217 = vrot.lane.b32.xlu0 %v3009_v19, %s2853_s16 }
  0x6a   :  { %1223 = vrot.lane.b32.xlu1 %v3016_v20, %s2853_s16  ;;  %1227 = vrot.lane.b32.xlu0 %v3030_v22, %s2853_s16 }
  0x6e   :  { %351 = vrot.lane.b32.xlu1 %v3134_v30, %s2852_s13  ;;  %349 = vrot.lane.b32.xlu0 %v3141_v31, %s2852_s13 }
  0x72   :  { %1233 = vrot.lane.b32.xlu1 %v3065_v27, %s2853_s16  ;;  %1231 = vrot.lane.b32.xlu0 %v3044_v24, %s2853_s16 }
  0x74   :  { %v292_v33 = vpop.permute.xlu1 %291  ;;  %v288_v34 = vpop.permute.xlu0 %287 }
  0x76   :  { %1229 = vrot.lane.b32.xlu1 %v3051_v25, %s2853_s16  ;;  %347 = vrot.lane.b32.xlu0 %v3154_v32, %s2852_s13 }
  0x78   :  { %v294_v37 = vpop.permute.xlu1 %293  ;;  %v290_v38 = vpop.permute.xlu0 %289 }
  0x79   :  { %v361_v39 = vsel %vm359_vm0, %v290_v38, %v292_v33  ;;  %v360_v40 = vsel %vm359_vm0, %v288_v34, %v290_v38 }
  0x7a   :  { %357 = vrot.lane.b32.xlu1 %v3161_v35, %s2852_s13  ;;  %355 = vrot.lane.b32.xlu0 %v3168_v36, %s2852_s13 }
  0x7b   :  { %418 = vmatprep.subr.bf16.mxu1 %v361_v39 }
  0x7c   :  { %419 = vmatpush1.bf16.msra.mxu1 %v360_v40  ;;  %v298_v41 = vpop.permute.xlu1 %297  ;;  %v296_v42 = vpop.permute.xlu0 %295 }
  0x7d   :  { %v363_v43 = vsel %vm359_vm0, %v296_v42, %v298_v41  ;;  %v362_v44 = vsel %vm359_vm0, %v294_v37, %v296_v42 }
  0x7e   :  { %1239 = vrot.lane.b32.xlu1 %v3072_v28, %s2853_s16  ;;  %1237 = vrot.lane.b32.xlu0 %v3079_v29, %s2853_s16 }
  0x7f   :  { %420 = vmatprep.subr.bf16.mxu1 %v363_v43 }
  0x80   :  { %421 = vmatpush1.bf16.msra.mxu1 %v362_v44  ;;  %v302_v46 = vpop.permute.xlu1 %301  ;;  %v300_v47 = vpop.permute.xlu0 %299 }
  0x81   :  { %v364_v51 = vsel %vm359_vm0, %v300_v47, %v302_v46 }
  0x82   :  { %1235 = vrot.lane.b32.xlu1 %v3058_v26, %s2853_s16  ;;  %353 = vrot.lane.b32.xlu0 %v3185_v45, %s2852_s13  ;;  %s2854_s13 = smov 110  }
  0x84   :  { %v306_v48 = vpop.permute.xlu1 %305  ;;  %v304_v49 = vpop.permute.xlu0 %303 }
  0x85   :  { %v365_v50 = vsel %vm359_vm0, %v302_v46, %v304_v49 }
  0x86   :  { %1245 = vrot.lane.b32.xlu1 %v3134_v30, %s2853_s16  ;;  %1243 = vrot.lane.b32.xlu0 %v3141_v31, %s2853_s16 }
  0x87   :  { %422 = vmatprep.subr.bf16.mxu1 %v365_v50 }
  0x88   :  { %423 = vmatpush1.bf16.msra.mxu1 %v364_v51  ;;  %v310_v52 = vpop.permute.xlu1 %309  ;;  %v308_v54 = vpop.permute.xlu0 %307 }
  0x89   :  { %v367_v55 = vsel %vm359_vm0, %v308_v54, %v310_v52  ;;  %v366_v56 = vsel %vm359_vm0, %v306_v48, %v308_v54 }
  0x8a   :  { %1249 = vrot.lane.b32.xlu1 %v3168_v36, %s2853_s16  ;;  %1241 = vrot.lane.b32.xlu0 %v3154_v32, %s2853_s16 }
  0x8b   :  { %424 = vmatprep.subr.bf16.mxu1 %v367_v55 }
  0x8c   :  { %425 = vmatpush1.bf16.msra.mxu1 %v366_v56  ;;  %v314_v57 = vpop.permute.xlu1 %313  ;;  %v312_v58 = vpop.permute.xlu0 %311 }
  0x8d   :  { %v368_v62 = vsel %vm359_vm0, %v312_v58, %v314_v57 }
  0x8e   :  { %1247 = vrot.lane.b32.xlu1 %v3185_v45, %s2853_s16  ;;  %1251 = vrot.lane.b32.xlu0 %v3161_v35, %s2853_s16  ;;  %s2859_s16 = smov 94  }
  0x90   :  { %v318_v59 = vpop.permute.xlu1 %317  ;;  %v316_v60 = vpop.permute.xlu0 %315 }
  0x91   :  { %v369_v61 = vsel %vm359_vm0, %v314_v57, %v316_v60 }
  0x92   :  { %1424 = vrot.lane.b32.xlu1 %v2878_v0, %s2854_s13  ;;  %1422 = vrot.lane.b32.xlu0 %v2897_v3, %s2854_s13 }
  0x93   :  { %426 = vmatprep.subr.bf16.mxu1 %v369_v61 }
  0x94   :  { %427 = vmatpush1.bf16.msra.mxu1 %v368_v62  ;;  %v322_v33 = vpop.permute.xlu1 %321  ;;  %v320_v34 = vpop.permute.xlu0 %319 }
  0x95   :  { %v371_v37 = vsel %vm359_vm0, %v320_v34, %v322_v33  ;;  %v370_v38 = vsel %vm359_vm0, %v318_v59, %v320_v34 }
  0x96   :  { %1428 = vrot.lane.b32.xlu1 %v2911_v5, %s2854_s13  ;;  %1420 = vrot.lane.b32.xlu0 %v2883_v1, %s2854_s13 }
  0x97   :  { %428 = vmatprep.subr.bf16.mxu1 %v371_v37 }
  0x98   :  { %429 = vmatpush1.bf16.msra.mxu1 %v370_v38  ;;  %v326_v39 = vpop.permute.xlu1 %325  ;;  %v324_v40 = vpop.permute.xlu0 %323 }
  0x99   :  { %v372_v44 = vsel %vm359_vm0, %v324_v40, %v326_v39 }
  0x9a   :  { %1426 = vrot.lane.b32.xlu1 %v2890_v2, %s2854_s13  ;;  %1430 = vrot.lane.b32.xlu0 %v2904_v4, %s2854_s13 }
  0x9c   :  { %v330_v41 = vpop.permute.xlu1 %329  ;;  %v328_v42 = vpop.permute.xlu0 %327 }
  0x9d   :  { %v373_v43 = vsel %vm359_vm0, %v326_v39, %v328_v42 }
  0x9e   :  { %1436 = vrot.lane.b32.xlu1 %v2939_v9, %s2854_s13  ;;  %1434 = vrot.lane.b32.xlu0 %v2918_v6, %s2854_s13 }
  0x9f   :  { %430 = vmatprep.subr.bf16.mxu1 %v373_v43 }
  0xa0   :  { %431 = vmatpush1.bf16.msra.mxu1 %v372_v44  ;;  %v334_v46 = vpop.permute.xlu1 %333  ;;  %v332_v47 = vpop.permute.xlu0 %331 }
  0xa1   :  { %v375_v48 = vsel %vm359_vm0, %v332_v47, %v334_v46  ;;  %v374_v49 = vsel %vm359_vm0, %v330_v41, %v332_v47 }
  0xa2   :  { %1440 = vrot.lane.b32.xlu1 %v2953_v11, %s2854_s13  ;;  %1432 = vrot.lane.b32.xlu0 %v2925_v7, %s2854_s13 }
  0xa3   :  { %432 = vmatprep.subr.bf16.mxu1 %v375_v48 }
  0xa4   :  { %433 = vmatpush1.bf16.msra.mxu1 %v374_v49  ;;  %v338_v50 = vpop.permute.xlu1 %337  ;;  %v336_v51 = vpop.permute.xlu0 %335 }
  0xa5   :  { %v376_v55 = vsel %vm359_vm0, %v336_v51, %v338_v50 }
  0xa6   :  { %1438 = vrot.lane.b32.xlu1 %v2932_v8, %s2854_s13  ;;  %1442 = vrot.lane.b32.xlu0 %v2946_v10, %s2854_s13 }
  0xa8   :  { %v342_v52 = vpop.permute.xlu1 %341  ;;  %v340_v53 = vpop.permute.xlu0 %339 }
  0xa9   :  { %v377_v54 = vsel %vm359_vm0, %v338_v50, %v340_v53 }
  0xaa   :  { %1448 = vrot.lane.b32.xlu1 %v2981_v15, %s2854_s13  ;;  %1446 = vrot.lane.b32.xlu0 %v2960_v12, %s2854_s13 }
  0xab   :  { %434 = vmatprep.subr.bf16.mxu1 %v377_v54 }
  0xac   :  { %435 = vmatpush1.bf16.msra.mxu1 %v376_v55  ;;  %v346_v56 = vpop.permute.xlu1 %345  ;;  %v344_v57 = vpop.permute.xlu0 %343 }
  0xad   :  { %v379_v58 = vsel %vm359_vm0, %v344_v57, %v346_v56  ;;  %v378_v59 = vsel %vm359_vm0, %v342_v52, %v344_v57 }
  0xae   :  { %1452 = vrot.lane.b32.xlu1 %v2995_v17, %s2854_s13  ;;  %1444 = vrot.lane.b32.xlu0 %v2967_v13, %s2854_s13 }
  0xaf   :  { %436 = vmatprep.subr.bf16.mxu1 %v379_v58 }
  0xb0   :  { %437 = vmatpush1.bf16.msra.mxu1 %v378_v59  ;;  %v1186_v60 = vpop.permute.xlu1 %1185  ;;  %v1184_v61 = vpop.permute.xlu0 %1183 }
  0xb1   :  { %v1255_v62 = vsel %vm1253_vm2, %v1184_v61, %v1186_v60 }
  0xb2   :  { %1450 = vrot.lane.b32.xlu1 %v2974_v14, %s2854_s13  ;;  %1454 = vrot.lane.b32.xlu0 %v2988_v16, %s2854_s13 }
  0xb3   :  { %1311 = vmatprep.subr.bf16.mxu0 %v1255_v62 }
  0xb4   :  { %v1190_v63 = vpop.permute.xlu1 %1189  ;;  %v1182_v33 = vpop.permute.xlu0 %1181 }
  0xb5   :  { %v1254_v34 = vsel %vm1253_vm2, %v1182_v33, %v1184_v61 }
  0xb6   :  { %1460 = vrot.lane.b32.xlu1 %v3023_v21, %s2854_s13  ;;  %1458 = vrot.lane.b32.xlu0 %v3002_v18, %s2854_s13 }
  0xb7   :  { %1312 = vmatpush1.bf16.msra.mxu0 %v1254_v34 }
  0xb8   :  { %v1188_v37 = vpop.permute.xlu1 %1187  ;;  %v1192_v38 = vpop.permute.xlu0 %1191 }
  0xb9   :  { %v1256_v39 = vsel %vm1253_vm2, %v1188_v37, %v1190_v63  ;;  %v1257_v40 = vsel %vm1253_vm2, %v1190_v63, %v1192_v38 }
  0xba   :  { %1464 = vrot.lane.b32.xlu1 %v3037_v23, %s2854_s13  ;;  %1456 = vrot.lane.b32.xlu0 %v3009_v19, %s2854_s13 }
  0xbb   :  { %1313 = vmatprep.subr.bf16.mxu0 %v1257_v40 }
  0xbc   :  { %1314 = vmatpush1.bf16.msra.mxu0 %v1256_v39  ;;  %v1198_v41 = vpop.permute.xlu1 %1197  ;;  %v1196_v42 = vpop.permute.xlu0 %1195 }
  0xbd   :  { %v1259_v43 = vsel %vm1253_vm2, %v1196_v42, %v1198_v41 }
  0xbe   :  { %1462 = vrot.lane.b32.xlu1 %v3016_v20, %s2854_s13  ;;  %1466 = vrot.lane.b32.xlu0 %v3030_v22, %s2854_s13 }
  0xbf   :  { %1315 = vmatprep.subr.bf16.mxu0 %v1259_v43 }
  0xc0   :  { %v1202_v44 = vpop.permute.xlu1 %1201  ;;  %v1194_v46 = vpop.permute.xlu0 %1193 }
  0xc1   :  { %v1258_v47 = vsel %vm1253_vm2, %v1194_v46, %v1196_v42 }
  0xc2   :  { %1472 = vrot.lane.b32.xlu1 %v3065_v27, %s2854_s13  ;;  %1470 = vrot.lane.b32.xlu0 %v3044_v24, %s2854_s13 }
  0xc3   :  { %1316 = vmatpush1.bf16.msra.mxu0 %v1258_v47 }
  0xc4   :  { %v1200_v48 = vpop.permute.xlu1 %1199  ;;  %v1204_v49 = vpop.permute.xlu0 %1203 }
  0xc5   :  { %v1260_v50 = vsel %vm1253_vm2, %v1200_v48, %v1202_v44  ;;  %v1261_v51 = vsel %vm1253_vm2, %v1202_v44, %v1204_v49 }
  0xc6   :  { %1476 = vrot.lane.b32.xlu1 %v3079_v29, %s2854_s13  ;;  %1468 = vrot.lane.b32.xlu0 %v3051_v25, %s2854_s13 }
  0xc7   :  { %1317 = vmatprep.subr.bf16.mxu0 %v1261_v51 }
  0xc8   :  { %1318 = vmatpush1.bf16.msra.mxu0 %v1260_v50  ;;  %v1210_v52 = vpop.permute.xlu1 %1209  ;;  %v1208_v53 = vpop.permute.xlu0 %1207 }
  0xc9   :  { %v1263_v54 = vsel %vm1253_vm2, %v1208_v53, %v1210_v52 }
  0xca   :  { %1474 = vrot.lane.b32.xlu1 %v3058_v26, %s2854_s13  ;;  %1478 = vrot.lane.b32.xlu0 %v3072_v28, %s2854_s13 }
  0xcb   :  { %1319 = vmatprep.subr.bf16.mxu0 %v1263_v54 }
  0xcc   :  { %v1214_v55 = vpop.permute.xlu1 %1213  ;;  %v1206_v56 = vpop.permute.xlu0 %1205 }
  0xcd   :  { %v1262_v57 = vsel %vm1253_vm2, %v1206_v56, %v1208_v53 }
  0xce   :  { %738 = vrot.lane.b32.xlu1 %v2878_v0, %s2855_s5  ;;  %736 = vrot.lane.b32.xlu0 %v2897_v3, %s2855_s5 }
  0xcf   :  { %1320 = vmatpush1.bf16.msra.mxu0 %v1262_v57 }
  0xd0   :  { %v1212_v58 = vpop.permute.xlu1 %1211  ;;  %v1216_v59 = vpop.permute.xlu0 %1215 }
  0xd1   :  { %v1264_v60 = vsel %vm1253_vm2, %v1212_v58, %v1214_v55  ;;  %v1265_v61 = vsel %vm1253_vm2, %v1214_v55, %v1216_v59 }
  0xd2   :  { %1484 = vrot.lane.b32.xlu1 %v3134_v30, %s2854_s13  ;;  %1482 = vrot.lane.b32.xlu0 %v3141_v31, %s2854_s13 }
  0xd3   :  { %1321 = vmatprep.subr.bf16.mxu0 %v1265_v61 }
  0xd4   :  { %1322 = vmatpush1.bf16.msra.mxu0 %v1264_v60  ;;  %v1222_v62 = vpop.permute.xlu1 %1221  ;;  %v1220_v63 = vpop.permute.xlu0 %1219 }
  0xd5   :  { %v1267_v33 = vsel %vm1253_vm2, %v1220_v63, %v1222_v62 }
  0xd6   :  { %1480 = vrot.lane.b32.xlu1 %v3154_v32, %s2854_s13  ;;  %734 = vrot.lane.b32.xlu0 %v2883_v1, %s2855_s5 }
  0xd7   :  { %1323 = vmatprep.subr.bf16.mxu0 %v1267_v33 }
  0xd8   :  { %v1226_v34 = vpop.permute.xlu1 %1225  ;;  %v1218_v37 = vpop.permute.xlu0 %1217 }
  0xd9   :  { %v1266_v38 = vsel %vm1253_vm2, %v1218_v37, %v1220_v63  ;;  %v2738_v63 = vld [vmem:[%s4253_s1 + $0x60] ss:$8 sps:$4 sm:$0xff]  }
  0xda   :  { %744 = vrot.lane.b32.xlu1 %v2904_v4, %s2855_s5  ;;  %742 = vrot.lane.b32.xlu0 %v2911_v5, %s2855_s5 }
  0xdb   :  { %1324 = vmatpush1.bf16.msra.mxu0 %v1266_v38 }
  0xdc   :  { %v1224_v39 = vpop.permute.xlu1 %1223  ;;  %v1228_v40 = vpop.permute.xlu0 %1227 }
  0xdd   :  { %v1268_v41 = vsel %vm1253_vm2, %v1224_v39, %v1226_v34  ;;  %v1269_v42 = vsel %vm1253_vm2, %v1226_v34, %v1228_v40  ;;  %v2741_v34 = vld [vmem:[%s4253_s1 + $0x74] ss:$8 sps:$4 sm:$0xff]   ;;  %v2743_v40 = vld [vmem:[%s4253_s1 + $0x70] ss:$8 sps:$4 sm:$0xff]  }
  0xde   :  { %1490 = vrot.lane.b32.xlu1 %v3161_v35, %s2854_s13  ;;  %1488 = vrot.lane.b32.xlu0 %v3168_v36, %s2854_s13 }
  0xdf   :  { %1325 = vmatprep.subr.bf16.mxu0 %v1269_v42 }
  0xe0   :  { %1326 = vmatpush1.bf16.msra.mxu0 %v1268_v41  ;;  %v352_v43 = vpop.permute.xlu1 %351  ;;  %v350_v44 = vpop.permute.xlu0 %349 }
  0xe1   :  { %v381_v46 = vsel %vm359_vm0, %v350_v44, %v352_v43 }
  0xe2   :  { %1486 = vrot.lane.b32.xlu1 %v3185_v45, %s2854_s13  ;;  %740 = vrot.lane.b32.xlu0 %v2890_v2, %s2855_s5 }
  0xe3   :  { %438 = vmatprep.subr.bf16.mxu1 %v381_v46 }
  0xe4   :  { %v1234_v47 = vpop.permute.xlu1 %1233  ;;  %v1232_v48 = vpop.permute.xlu0 %1231 }
  0xe5   :  { %v1271_v49 = vsel %vm1253_vm2, %v1232_v48, %v1234_v47  ;;  %v2746_v47 = vld [vmem:[%s4253_s1 + $0x80] ss:$8 sps:$4 sm:$0xff]  }
  0xe6   :  { %750 = vrot.lane.b32.xlu1 %v2939_v9, %s2855_s5  ;;  %748 = vrot.lane.b32.xlu0 %v2918_v6, %s2855_s5 }
  0xe7   :  { %1327 = vmatprep.subr.bf16.mxu0 %v1271_v49  ;;  %v2749_v49 = vld [vmem:[%s4253_s1 + $0x4] ss:$8 sps:$4 sm:$0xff]  }
  0xe8   :  { %v1230_v50 = vpop.permute.xlu1 %1229  ;;  %v348_v51 = vpop.permute.xlu0 %347 }
  0xe9   :  { %v1270_v52 = vsel %vm1253_vm2, %v1230_v50, %v1232_v48  ;;  %v380_v53 = vsel %vm359_vm0, %v348_v51, %v350_v44  ;;  %v2735_v44 = vld [vmem:[%s4253_s1 + $0xc0] ss:$8 sps:$4 sm:$0xff]  }
  0xea   :  { %1663 = vrot.lane.b32.xlu1 %v2878_v0, %s2856_s6  ;;  %1328 = vmatpush1.bf16.msra.mxu0 %v1270_v52 }
  0xeb   :  { %1661 = vrot.lane.b32.xlu0 %v2897_v3, %s2856_s6  ;;  %439 = vmatpush1.bf16.msra.mxu1 %v380_v53 }
  0xec   :  { %v358_v54 = vpop.permute.xlu1 %357  ;;  %v356_v55 = vpop.permute.xlu0 %355 }
  0xed   :  { %v383_v56 = vsel %vm359_vm0, %v356_v55, %v358_v54  ;;  %v2752_v54 = vld [vmem:[%s4253_s1 + $0xd0] ss:$8 sps:$4 sm:$0xff]  }
  0xee   :  { %1659 = vrot.lane.b32.xlu1 %v2883_v1, %s2856_s6  ;;  %440 = vmatprep.subr.bf16.mxu1 %v383_v56  ;;  %v2753_v56 = vld [vmem:[%s4253_s1 + $0xe4] ss:$8 sps:$4 sm:$0xff]  }
  0xef   :  { %746 = vrot.lane.b32.xlu0 %v2925_v7, %s2855_s5 }
  0xf0   :  { %v1240_v57 = vpop.permute.xlu1 %1239  ;;  %v1238_v0 = vpop.permute.xlu0 %1237 }
  0xf1   :  { %v1273_v58 = vsel %vm1253_vm2, %v1238_v0, %v1240_v57 }
  0xf2   :  { %756 = vrot.lane.b32.xlu1 %v2946_v10, %s2855_s5  ;;  %1329 = vmatprep.subr.bf16.mxu0 %v1273_v58 }
  0xf3   :  { %754 = vrot.lane.b32.xlu0 %v2953_v11, %s2855_s5 }
  0xf4   :  { %v1236_v59 = vpop.permute.xlu1 %1235  ;;  %v354_v60 = vpop.permute.xlu0 %353 }
  0xf5   :  { %v1272_v61 = vsel %vm1253_vm2, %v1236_v59, %v1238_v0  ;;  %v382_v62 = vsel %vm359_vm0, %v354_v60, %v356_v55  ;;  %v2755_v59 = vld [vmem:[%s4253_s1 + $0xe0] ss:$8 sps:$4 sm:$0xff]   ;;  %v2758_v60 = vld [vmem:[%s4253_s1 + $0xf4] ss:$8 sps:$4 sm:$0xff]  }
  0xf6   :  { %1669 = vrot.lane.b32.xlu1 %v2904_v4, %s2856_s6  ;;  %1330 = vmatpush1.bf16.msra.mxu0 %v1272_v61 }
  0xf7   :  { %1667 = vrot.lane.b32.xlu0 %v2911_v5, %s2856_s6  ;;  %441 = vmatpush1.bf16.msra.mxu1 %v382_v62 }
  0xf8   :  { %v1246_v33 = vpop.permute.xlu1 %1245  ;;  %637 = vmatprep.subr.bf16.mxu1 %v2897_v3  ;;  %v1244_v37 = vpop.permute.xlu0 %1243 }
  0xf9   :  { %v1275_v4 = vsel %vm1253_vm2, %v1244_v37, %v1246_v33 }
  0xfa   :  { %1665 = vrot.lane.b32.xlu1 %v2890_v2, %s2856_s6  ;;  %451 = vmatmul.mubr.bf16.vlgmr.msra.gmra.mrb[0].mxu1 %v2738_v63 }
  0xfb   :  { %752 = vrot.lane.b32.xlu0 %v2932_v8, %s2855_s5  ;;  %1331 = vmatprep.subr.bf16.mxu0 %v1275_v4 }
  0xfc   :  { %v1250_v38 = vpop.permute.xlu1 %1249  ;;  %638 = vmatpush1.bf16.msra.mxu1 %v2883_v1  ;;  %2425 = vmatprep.mubr.msk.bf16.mxu1 %vm408_vm1, %v2741_v34  ;;  %v1242_v3 = vpop.permute.xlu0 %1241 }
  0xfd   :  { %639 = vmatprep.subr.bf16.mxu1 %v2911_v5  ;;  %v1274_v39 = vsel %vm1253_vm2, %v1242_v3, %v1244_v37  ;;  %v2744_v5 = vld [vmem:[%s4253_s1 + $0x84] ss:$8 sps:$4 sm:$0xff]  }
  0xfe   :  { %762 = vrot.lane.b32.xlu1 %v2981_v15, %s2855_s5  ;;  %1332 = vmatpush1.bf16.msra.mxu0 %v1274_v39 }
  0xff   :  { %760 = vrot.lane.b32.xlu0 %v2960_v12, %s2855_s5 }
 0x100   :  { %v1248_v41 = vpop.permute.xlu1 %1247  ;;  %640 = vmatpush1.bf16.msra.mxu1 %v2890_v2  ;;  %v1252_v1 = vpop.permute.xlu0 %1251 }
 0x101   :  { %v1276_v42 = vsel %vm1253_vm2, %v1248_v41, %v1250_v38  ;;  %641 = vmatprep.subr.bf16.mxu1 %v2918_v6  ;;  %v1277_v43 = vsel %vm1253_vm2, %v1250_v38, %v1252_v1  ;;  %v2747_v1 = vld [vmem:[%s4253_s1] ss:$8 sps:$4 sm:$0xff]  }
 0x102   :  { %1675 = vrot.lane.b32.xlu1 %v2939_v9, %s2856_s6  ;;  %461 = vmatmul.mubr.bf16.gmra.mrb[4].mxu1 %v2743_v40  ;;  %v2750_v9 = vld [vmem:[%s4253_s1 + $0xd4] ss:$8 sps:$4 sm:$0xff]  }
 0x103   :  { %1673 = vrot.lane.b32.xlu0 %v2918_v6, %s2856_s6  ;;  %1333 = vmatprep.subr.bf16.mxu0 %v1277_v43 }
 0x104   :  { %1334 = vmatpush1.bf16.msra.mxu0 %v1276_v42  ;;  %v1425_v2 = vpop.permute.xlu1 %1424  ;;  %642 = vmatpush1.bf16.msra.mxu1 %v2925_v7  ;;  %v1423_v46 = vpop.permute.xlu0 %1422 }
 0x105   :  { %643 = vmatprep.subr.bf16.mxu1 %v2953_v11  ;;  %2426 = vmatprep.mubr.msk.bf16.mxu1 %vm408_vm1, %v2744_v5  ;;  %v1494_v6 = vsel %vm1492_vm3, %v1423_v46, %v1425_v2 }
 0x106   :  { %1671 = vrot.lane.b32.xlu1 %v2925_v7, %s2856_s6  ;;  %1550 = vmatprep.subr.bf16.mxu0 %v1494_v6 }
 0x107   :  { %758 = vrot.lane.b32.xlu0 %v2967_v13, %s2855_s5  ;;  %1344 = vmatmul.mubr.bf16.vlgmr.msra.gmra.mrb[0].mxu0 %v2735_v44 }
 0x108   :  { %v1429_v48 = vpop.permute.xlu1 %1428  ;;  %644 = vmatpush1.bf16.msra.mxu1 %v2932_v8  ;;  %v1421_v50 = vpop.permute.xlu0 %1420  ;;  %2497 = vmatprep.mubr.msk.bf16.mxu0 %vm408_vm1, %v2750_v9 }
 0x109   :  { %645 = vmatprep.subr.bf16.mxu1 %v2960_v12  ;;  %v1493_v7 = vsel %vm1492_vm3, %v1421_v50, %v1423_v46 }
 0x10a   :  { %768 = vrot.lane.b32.xlu1 %v2988_v16, %s2855_s5  ;;  %471 = vmatmul.mubr.bf16.gmra.mrb[8].mxu1 %v2746_v47 }
 0x10b   :  { %766 = vrot.lane.b32.xlu0 %v2995_v17, %s2855_s5  ;;  %1551 = vmatpush1.bf16.msra.mxu0 %v1493_v7 }
 0x10c   :  { %v1427_v51 = vpop.permute.xlu1 %1426  ;;  %646 = vmatpush1.bf16.msra.mxu1 %v2967_v13  ;;  %2457 = vmatprep.mubr.msk.bf16.mxu1 %vm408_vm1, %v2749_v49  ;;  %v1431_v53 = vpop.permute.xlu0 %1430 }
 0x10d   :  { %v1495_v52 = vsel %vm1492_vm3, %v1427_v51, %v1429_v48  ;;  %647 = vmatprep.subr.bf16.mxu1 %v2995_v17  ;;  %v1496_v55 = vsel %vm1492_vm3, %v1429_v48, %v1431_v53  ;;  %v2759_v51 = vld [vmem:[%s4253_s1 + $0x14] ss:$8 sps:$4 sm:$0xff]   ;;  %v2761_v53 = vld [vmem:[%s4253_s1 + $0x10] ss:$8 sps:$4 sm:$0xff]  }
 0x10e   :  { %1681 = vrot.lane.b32.xlu1 %v2946_v10, %s2856_s6  ;;  %1552 = vmatprep.subr.bf16.mxu0 %v1496_v55 }
 0x10f   :  { %1679 = vrot.lane.b32.xlu0 %v2953_v11, %s2856_s6  ;;  %1553 = vmatpush1.bf16.msra.mxu0 %v1495_v52 }
 0x110   :  { %v1437_v57 = vpop.permute.xlu1 %1436  ;;  %648 = vmatpush1.bf16.msra.mxu1 %v2974_v14  ;;  %v1435_v0 = vpop.permute.xlu0 %1434  ;;  %1354 = vmatmul.mubr.bf16.gmra.mrb[4].mxu0 %v2752_v54  ;;  %v3546_v54 = vld [vmem:[%s4252_s0 + $0xc8] ss:$12 sps:$4 sm:$0xff]  }
 0x111   :  { %649 = vmatprep.subr.bf16.mxu1 %v3002_v18  ;;  %v1498_v10 = vsel %vm1492_vm3, %v1435_v0, %v1437_v57  ;;  %2498 = vmatprep.mubr.msk.bf16.mxu0 %vm408_vm1, %v2753_v56  ;;  %v3561_v57 = vld [vmem:[%s4252_s0 + $0xc0] ss:$12 sps:$4 sm:$0xff]  }
 0x112   :  { %1677 = vrot.lane.b32.xlu1 %v2932_v8, %s2856_s6  ;;  %1554 = vmatprep.subr.bf16.mxu0 %v1498_v10 }
 0x113   :  { %764 = vrot.lane.b32.xlu0 %v2974_v14, %s2855_s5 }
 0x114   :  { %v1441_v11 = vpop.permute.xlu1 %1440  ;;  %650 = vmatpush1.bf16.msra.mxu1 %v3009_v19  ;;  %v1433_v58 = vpop.permute.xlu0 %1432 }
 0x115   :  { %651 = vmatprep.subr.bf16.mxu1 %v3037_v23  ;;  %v1497_v8 = vsel %vm1492_vm3, %v1433_v58, %v1435_v0 }
 0x116   :  { %774 = vrot.lane.b32.xlu1 %v3023_v21, %s2855_s5  ;;  %1555 = vmatpush1.bf16.msra.mxu0 %v1497_v8 }
 0x117   :  { %772 = vrot.lane.b32.xlu0 %v3002_v18, %s2855_s5 }
 0x118   :  { %v1439_v61 = vpop.permute.xlu1 %1438  ;;  %652 = vmatpush1.bf16.msra.mxu1 %v3016_v20  ;;  %v1443_v63 = vpop.permute.xlu0 %1442  ;;  %1364 = vmatmul.mubr.bf16.gmra.mrb[8].mxu0 %v2755_v59  ;;  %v2764_v59 = vld [vmem:[%s4253_s1 + $0x20] ss:$8 sps:$4 sm:$0xff]  }
 0x119   :  { %v1499_v62 = vsel %vm1492_vm3, %v1439_v61, %v1441_v11  ;;  %653 = vmatprep.subr.bf16.mxu1 %v3044_v24  ;;  %v1500_v33 = vsel %vm1492_vm3, %v1441_v11, %v1443_v63  ;;  %2511 = vmatprep.mubr.msk.bf16.mxu0 %vm408_vm1, %v2758_v60  ;;  %v2762_v11 = vld [vmem:[%s4253_s1 + $0x24] ss:$8 sps:$4 sm:$0xff]  }
 0x11a   :  { %1687 = vrot.lane.b32.xlu1 %v2981_v15, %s2856_s6  ;;  %1556 = vmatprep.subr.bf16.mxu0 %v1500_v33 }
 0x11b   :  { %1685 = vrot.lane.b32.xlu0 %v2960_v12, %s2856_s6  ;;  %1557 = vmatpush1.bf16.msra.mxu0 %v1499_v62  ;;  %v2756_v62 = vld [vmem:[%s4253_s1 + $0xf0] ss:$8 sps:$4 sm:$0xff]  }
 0x11c   :  { %v1449_v34 = vpop.permute.xlu1 %1448  ;;  %654 = vmatpush1.bf16.msra.mxu1 %v3051_v25  ;;  %v1447_v37 = vpop.permute.xlu0 %1446 }
 0x11d   :  { %655 = vmatprep.subr.bf16.mxu1 %v3079_v29  ;;  %v1502_v15 = vsel %vm1492_vm3, %v1447_v37, %v1449_v34  ;;  %v2767_v34 = vld [vmem:[%s4253_s1 + $0x94] ss:$8 sps:$4 sm:$0xff]  }
 0x11e   :  { %1683 = vrot.lane.b32.xlu1 %v2967_v13, %s2856_s6  ;;  %1558 = vmatprep.subr.bf16.mxu0 %v1502_v15  ;;  %v3605_v15 = vld [vmem:[%s4252_s0 + $0xd8] ss:$12 sps:$4 sm:$0xff]  }
 0x11f   :  { %770 = vrot.lane.b32.xlu0 %v3009_v19, %s2855_s5 }
 0x120   :  { %v1453_v4 = vpop.permute.xlu1 %1452  ;;  %656 = vmatpush1.bf16.msra.mxu1 %v3058_v26  ;;  %v1445_v12 = vpop.permute.xlu0 %1444 }
 0x121   :  { %657 = vmatprep.subr.bf16.mxu1 %v3141_v31  ;;  %v1501_v38 = vsel %vm1492_vm3, %v1445_v12, %v1447_v37 }
 0x122   :  { %780 = vrot.lane.b32.xlu1 %v3030_v22, %s2855_s5  ;;  %1559 = vmatpush1.bf16.msra.mxu0 %v1501_v38 }
 0x123   :  { %778 = vrot.lane.b32.xlu0 %v3037_v23, %s2855_s5 }
 0x124   :  { %v1451_v13 = vpop.permute.xlu1 %1450  ;;  %658 = vmatpush1.bf16.msra.mxu1 %v3154_v32  ;;  %v1455_v39 = vpop.permute.xlu0 %1454 }
 0x125   :  { %v1503_v3 = vsel %vm1492_vm3, %v1451_v13, %v1453_v4  ;;  %659 = vmatprep.subr.bf16.mxu1 %v3168_v36  ;;  %v1504_v40 = vsel %vm1492_vm3, %v1453_v4, %v1455_v39  ;;  %v3616_v13 = vld [vmem:[%s4252_s0 + $0x8] ss:$12 sps:$4 sm:$0xff]   ;;  %v3624_v39 = vld [vmem:[%s4252_s0 + $0x4] ss:$12 sps:$4 sm:$0xff]  }
 0x126   :  { %1693 = vrot.lane.b32.xlu1 %v2988_v16, %s2856_s6  ;;  %1560 = vmatprep.subr.bf16.mxu0 %v1504_v40  ;;  %v2768_v40 = vld [vmem:[%s4253_s1 + $0x104] ss:$8 sps:$4 sm:$0xff]  }
 0x127   :  { %1691 = vrot.lane.b32.xlu0 %v2995_v17, %s2856_s6  ;;  %1561 = vmatpush1.bf16.msra.mxu0 %v1503_v3 }
 0x128   :  { %v1461_v41 = vpop.permute.xlu1 %1460  ;;  %660 = vmatpush1.bf16.msra.mxu1 %v3185_v45  ;;  %v1459_v42 = vpop.permute.xlu0 %1458 }
 0x129   :  { %v1506_v16 = vsel %vm1492_vm3, %v1459_v42, %v1461_v41 }
 0x12a   :  { %1689 = vrot.lane.b32.xlu1 %v2974_v14, %s2856_s6  ;;  %1562 = vmatprep.subr.bf16.mxu0 %v1506_v16 }
 0x12b   :  { %776 = vrot.lane.b32.xlu0 %v3016_v20, %s2855_s5  ;;  %670 = vmatmul.mubr.bf16.vlgmr.msra.gmra.mrb[0].mxu1 %v2747_v1 }
 0x12c   :  { %v1465_v17 = vpop.permute.xlu1 %1464  ;;  %v1457_v5 = vpop.permute.xlu0 %1456  ;;  %2458 = vmatprep.mubr.msk.bf16.mxu1 %vm408_vm1, %v2759_v51 }
 0x12d   :  { %v1505_v43 = vsel %vm1492_vm3, %v1457_v5, %v1459_v42  ;;  %v2770_v42 = vld [vmem:[%s4253_s1 + $0x100] ss:$8 sps:$4 sm:$0xff]  }
 0x12e   :  { %786 = vrot.lane.b32.xlu1 %v3065_v27, %s2855_s5  ;;  %1563 = vmatpush1.bf16.msra.mxu0 %v1505_v43  ;;  %v3646_v5 = vld [vmem:[%s4252_s0 + $0xf4] ss:$12 sps:$4 sm:$0xff]  }
 0x12f   :  { %784 = vrot.lane.b32.xlu0 %v3044_v24, %s2855_s5 }
 0x130   :  { %v1463_v2 = vpop.permute.xlu1 %1462  ;;  %v1467_v44 = vpop.permute.xlu0 %1466 }
 0x131   :  { %v1507_v14 = vsel %vm1492_vm3, %v1463_v2, %v1465_v17  ;;  %v1508_v20 = vsel %vm1492_vm3, %v1465_v17, %v1467_v44  ;;  %v3639_v17 = vld [vmem:[%s4252_s0 + $0xf8] ss:$12 sps:$4 sm:$0xff]  }
 0x132   :  { %1699 = vrot.lane.b32.xlu1 %v3023_v21, %s2856_s6  ;;  %1564 = vmatprep.subr.bf16.mxu0 %v1508_v20  ;;  %v3662_v20 = vld [vmem:[%s4252_s0] ss:$12 sps:$4 sm:$0xff]  }
 0x133   :  { %1697 = vrot.lane.b32.xlu0 %v3002_v18, %s2856_s6  ;;  %1565 = vmatpush1.bf16.msra.mxu0 %v1507_v14  ;;  %v3654_v14 = vld [vmem:[%s4252_s0 + $0xf0] ss:$12 sps:$4 sm:$0xff]  }
 0x134   :  { %v1473_v46 = vpop.permute.xlu1 %1472  ;;  %v1471_v27 = vpop.permute.xlu0 %1470  ;;  %680 = vmatmul.mubr.bf16.gmra.mrb[4].mxu1 %v2761_v53 }
 0x135   :  { %v1510_v24 = vsel %vm1492_vm3, %v1471_v27, %v1473_v46  ;;  %2459 = vmatprep.mubr.msk.bf16.mxu1 %vm408_vm1, %v2762_v11 }
 0x136   :  { %1695 = vrot.lane.b32.xlu1 %v3009_v19, %s2856_s6  ;;  %1566 = vmatprep.subr.bf16.mxu0 %v1510_v24 }
 0x137   :  { %782 = vrot.lane.b32.xlu0 %v3051_v25, %s2855_s5 }
 0x138   :  { %v1477_v9 = vpop.permute.xlu1 %1476  ;;  %v1469_v21 = vpop.permute.xlu0 %1468 }
 0x139   :  { %v1509_v6 = vsel %vm1492_vm3, %v1469_v21, %v1471_v27  ;;  %v2771_v27 = vld [vmem:[%s4253_s1 + $0x114] ss:$8 sps:$4 sm:$0xff]   ;;  %v3675_v21 = vld [vmem:[%s4252_s0 + $0x20] ss:$12 sps:$4 sm:$0xff]  }
 0x13a   :  { %792 = vrot.lane.b32.xlu1 %v3072_v28, %s2855_s5  ;;  %1567 = vmatpush1.bf16.msra.mxu0 %v1509_v6 }
 0x13b   :  { %790 = vrot.lane.b32.xlu0 %v3079_v29, %s2855_s5  ;;  %v3523_v29 = vld [vmem:[%s4252_s0 + $0xa8] ss:$12 sps:$4 sm:$0xff]  }
 0x13c   :  { %v1475_v18 = vpop.permute.xlu1 %1474  ;;  %v1479_v47 = vpop.permute.xlu0 %1478  ;;  %690 = vmatmul.mubr.bf16.gmra.mrb[8].mxu1 %v2764_v59 }
 0x13d   :  { %v1511_v19 = vsel %vm1492_vm3, %v1475_v18, %v1477_v9  ;;  %v1512_v25 = vsel %vm1492_vm3, %v1477_v9, %v1479_v47  ;;  %2472 = vmatprep.mubr.msk.bf16.mxu1 %vm408_vm1, %v2767_v34  ;;  %v2773_v9 = vld [vmem:[%s4253_s1 + $0x110] ss:$8 sps:$4 sm:$0xff]   ;;  %v3684_v18 = vld [vmem:[%s4252_s0 + $0x1c] ss:$12 sps:$4 sm:$0xff]  }
 0x13e   :  { %1705 = vrot.lane.b32.xlu1 %v3030_v22, %s2856_s6  ;;  %1568 = vmatprep.subr.bf16.mxu0 %v1512_v25  ;;  %v3765_v34 = vld [vmem:[%s4252_s0 + $0x4c] ss:$12 sps:$4 sm:$0xff]  }
 0x13f   :  { %1703 = vrot.lane.b32.xlu0 %v3037_v23, %s2856_s6  ;;  %1569 = vmatpush1.bf16.msra.mxu0 %v1511_v19 }
 0x140   :  { %v739_v28 = vpop.permute.xlu1 %738  ;;  %v737_v48 = vpop.permute.xlu0 %736 }
 0x141   :  { %v808_v22 = vsel %vm806_vm4, %v737_v48, %v739_v28 }
 0x142   :  { %1701 = vrot.lane.b32.xlu1 %v3523_v29, %s2856_s6  ;;  %864 = vmatprep.subr.bf16.mxu1 %v808_v22  ;;  %v3700_v22 = vld [vmem:[%s4252_s0 + $0x10c] ss:$12 sps:$4 sm:$0xff]  }
 0x143   :  { %788 = vrot.lane.b32.xlu0 %v3058_v26, %s2855_s5 }
 0x144   :  { %v1485_v23 = vpop.permute.xlu1 %1484  ;;  %v1483_v49 = vpop.permute.xlu0 %1482 }
 0x145   :  { %v1514_v50 = vsel %vm1492_vm3, %v1483_v49, %v1485_v23 }
 0x146   :  { %798 = vrot.lane.b32.xlu1 %v3134_v30, %s2855_s5  ;;  %1570 = vmatprep.subr.bf16.mxu0 %v1514_v50 }
 0x147   :  { %796 = vrot.lane.b32.xlu0 %v3141_v31, %s2855_s5  ;;  %v3553_v31 = vld [vmem:[%s4252_s0 + $0xc4] ss:$12 sps:$4 sm:$0xff]  }
 0x148   :  { %v1481_v7 = vpop.permute.xlu1 %1480  ;;  %v735_v26 = vpop.permute.xlu0 %734 }
 0x149   :  { %v1513_v52 = vsel %vm1492_vm3, %v1481_v7, %v1483_v49  ;;  %v807_v30 = vsel %vm806_vm4, %v735_v26, %v737_v48  ;;  %v3693_v48 = vld [vmem:[%s4252_s0 + $0x110] ss:$12 sps:$4 sm:$0xff]   ;;  %v2776_v49 = vld [vmem:[%s4253_s1 + $0x124] ss:$8 sps:$4 sm:$0xff]   ;;  %v3710_v7 = vld [vmem:[%s4252_s0 + $0x108] ss:$12 sps:$4 sm:$0xff]  }
 0x14a   :  { %1711 = vrot.lane.b32.xlu1 %v3546_v54, %s2856_s6  ;;  %1571 = vmatpush1.bf16.msra.mxu0 %v1513_v52  ;;  %v3719_v52 = vld [vmem:[%s4252_s0 + $0x18] ss:$12 sps:$4 sm:$0xff]  }
 0x14b   :  { %1709 = vrot.lane.b32.xlu0 %v3553_v31, %s2856_s6  ;;  %865 = vmatpush1.bf16.msra.mxu1 %v807_v30  ;;  %v3726_v30 = vld [vmem:[%s4252_s0 + $0x38] ss:$12 sps:$4 sm:$0xff]  }
 0x14c   :  { %v745_v55 = vpop.permute.xlu1 %744  ;;  %v743_v56 = vpop.permute.xlu0 %742 }
 0x14d   :  { %v810_v0 = vsel %vm806_vm4, %v743_v56, %v745_v55 }
 0x14e   :  { %1707 = vrot.lane.b32.xlu1 %v3561_v57, %s2856_s6  ;;  %866 = vmatprep.subr.bf16.mxu1 %v810_v0 }
 0x14f   :  { %794 = vrot.lane.b32.xlu0 %v3154_v32, %s2855_s5 }
 0x150   :  { %v1491_v10 = vpop.permute.xlu1 %1490  ;;  %v1489_v58 = vpop.permute.xlu0 %1488 }
 0x151   :  { %v1516_v8 = vsel %vm1492_vm3, %v1489_v58, %v1491_v10 }
 0x152   :  { %804 = vrot.lane.b32.xlu1 %v3161_v35, %s2855_s5  ;;  %1572 = vmatprep.subr.bf16.mxu0 %v1516_v8  ;;  %v3588_v35 = vld [vmem:[%s4252_s0 + $0xe0] ss:$12 sps:$4 sm:$0xff]  }
 0x153   :  { %802 = vrot.lane.b32.xlu0 %v3168_v36, %s2855_s5  ;;  %v3595_v36 = vld [vmem:[%s4252_s0 + $0xdc] ss:$12 sps:$4 sm:$0xff]  }
 0x154   :  { %v1487_v32 = vpop.permute.xlu1 %1486  ;;  %v741_v61 = vpop.permute.xlu0 %740 }
 0x155   :  { %v1515_v60 = vsel %vm1492_vm3, %v1487_v32, %v1489_v58  ;;  %v809_v63 = vsel %vm806_vm4, %v741_v61, %v743_v56  ;;  %v3734_v56 = vld [vmem:[%s4252_s0 + $0x34] ss:$12 sps:$4 sm:$0xff]  }
 0x156   :  { %1717 = vrot.lane.b32.xlu1 %v3588_v35, %s2856_s6  ;;  %1573 = vmatpush1.bf16.msra.mxu0 %v1515_v60  ;;  %v3750_v60 = vld [vmem:[%s4252_s0 + $0x30] ss:$12 sps:$4 sm:$0xff]  }
 0x157   :  { %1715 = vrot.lane.b32.xlu0 %v3595_v36, %s2856_s6  ;;  %867 = vmatpush1.bf16.msra.mxu1 %v809_v63  ;;  %v3757_v63 = vld [vmem:[%s4252_s0 + $0x50] ss:$12 sps:$4 sm:$0xff]  }
 0x158   :  { %v751_v33 = vpop.permute.xlu1 %750  ;;  %v749_v37 = vpop.permute.xlu0 %748 }
 0x159   :  { %1583 = vmatmul.mubr.bf16.vlgmr.msra.gmra.mrb[0].mxu0 %v2756_v62  ;;  %v812_v4 = vsel %vm806_vm4, %v749_v37, %v751_v33 }
 0x15a   :  { %1713 = vrot.lane.b32.xlu1 %v3605_v15, %s2856_s6  ;;  %868 = vmatprep.subr.bf16.mxu1 %v812_v4 }
 0x15b   :  { %800 = vrot.lane.b32.xlu0 %v3185_v45, %s2855_s5  ;;  %2512 = vmatprep.mubr.msk.bf16.mxu0 %vm408_vm1, %v2768_v40 }
 0x15c   :  { %v1664_v12 = vpop.permute.xlu1 %1663 }
 0x15d   :  { %v1662_v38 = vpop.permute.xlu0 %1661 }
 0x15e   :  { %958 = vrot.lane.b32.xlu1 %v3616_v13, %s2857_s9  ;;  %v1733_v3 = vsel %vm1731_vm5, %v1662_v38, %v1664_v12 }
 0x15f   :  { %956 = vrot.lane.b32.xlu0 %v3624_v39, %s2857_s9  ;;  %1789 = vmatprep.subr.bf16.mxu0 %v1733_v3 }
 0x160   :  { %v1660_v45 = vpop.permute.xlu1 %1659 }
 0x161   :  { %v1732_v41 = vsel %vm1731_vm5, %v1660_v45, %v1662_v38  ;;  %v747_v1 = vpop.permute.xlu0 %746  ;;  %1593 = vmatmul.mubr.bf16.gmra.mrb[4].mxu0 %v2770_v42 }
 0x162   :  { %v811_v16 = vsel %vm806_vm4, %v747_v1, %v749_v37  ;;  %1723 = vrot.lane.b32.xlu1 %v3639_v17, %s2856_s6  ;;  %1790 = vmatpush1.bf16.msra.mxu0 %v1732_v41  ;;  %v3781_v41 = vld [vmem:[%s4252_s0 + $0x48] ss:$12 sps:$4 sm:$0xff]  }
 0x163   :  { %1721 = vrot.lane.b32.xlu0 %v3646_v5, %s2856_s6  ;;  %869 = vmatpush1.bf16.msra.mxu1 %v811_v16  ;;  %v3788_v16 = vld [vmem:[%s4252_s0 + $0x68] ss:$12 sps:$4 sm:$0xff]  }
 0x164   :  { %v757_v43 = vpop.permute.xlu1 %756  ;;  %2513 = vmatprep.mubr.msk.bf16.mxu0 %vm408_vm1, %v2771_v27 }
 0x165   :  { %v755_v2 = vpop.permute.xlu0 %754 }
 0x166   :  { %1719 = vrot.lane.b32.xlu1 %v3654_v14, %s2856_s6  ;;  %v814_v44 = vsel %vm806_vm4, %v755_v2, %v757_v43 }
 0x167   :  { %954 = vrot.lane.b32.xlu0 %v3662_v20, %s2857_s9  ;;  %870 = vmatprep.subr.bf16.mxu1 %v814_v44 }
 0x168   :  { %v1670_v46 = vpop.permute.xlu1 %1669 }
 0x169   :  { %v1668_v24 = vpop.permute.xlu0 %1667  ;;  %1603 = vmatmul.mubr.bf16.gmra.mrb[8].mxu0 %v2773_v9 }
 0x16a   :  { %964 = vrot.lane.b32.xlu1 %v3675_v21, %s2857_s9  ;;  %v1735_v6 = vsel %vm1731_vm5, %v1668_v24, %v1670_v46  ;;  %2526 = vmatprep.mubr.msk.bf16.mxu0 %vm408_vm1, %v2776_v49 }
 0x16b   :  { %962 = vrot.lane.b32.xlu0 %v3684_v18, %s2857_s9  ;;  %1791 = vmatprep.subr.bf16.mxu0 %v1735_v6 }
 0x16c   :  { %v1666_v19 = vpop.permute.xlu1 %1665 }
 0x16d   :  { %v1734_v47 = vsel %vm1731_vm5, %v1666_v19, %v1668_v24  ;;  %v753_v25 = vpop.permute.xlu0 %752 }
 0x16e   :  { %v813_v28 = vsel %vm806_vm4, %v753_v25, %v755_v2  ;;  %1729 = vrot.lane.b32.xlu1 %v3693_v48, %s2856_s6  ;;  %1792 = vmatpush1.bf16.msra.mxu0 %v1734_v47  ;;  %v3796_v2 = vld [vmem:[%s4252_s0 + $0x64] ss:$12 sps:$4 sm:$0xff]   ;;  %v3812_v47 = vld [vmem:[%s4252_s0 + $0x60] ss:$12 sps:$4 sm:$0xff]  }
 0x16f   :  { %1727 = vrot.lane.b32.xlu0 %v3700_v22, %s2856_s6  ;;  %871 = vmatpush1.bf16.msra.mxu1 %v813_v28 }
 0x170   :  { %v763_v23 = vpop.permute.xlu1 %762 }
 0x171   :  { %v761_v50 = vpop.permute.xlu0 %760 }
 0x172   :  { %1725 = vrot.lane.b32.xlu1 %v3710_v7, %s2856_s6  ;;  %v816_v51 = vsel %vm806_vm4, %v761_v50, %v763_v23  ;;  %v3819_v23 = vld [vmem:[%s4252_s0 + $0x80] ss:$12 sps:$4 sm:$0xff]  }
 0x173   :  { %960 = vrot.lane.b32.xlu0 %v3719_v52, %s2857_s9  ;;  %872 = vmatprep.subr.bf16.mxu1 %v816_v51 }
 0x174   :  { %v1676_v26 = vpop.permute.xlu1 %1675 }
 0x175   :  { %v1674_v53 = vpop.permute.xlu0 %1673 }
 0x176   :  { %970 = vrot.lane.b32.xlu1 %v3726_v30, %s2857_s9  ;;  %v1737_v55 = vsel %vm1731_vm5, %v1674_v53, %v1676_v26 }
 0x177   :  { %968 = vrot.lane.b32.xlu0 %v3734_v56, %s2857_s9  ;;  %1793 = vmatprep.subr.bf16.mxu0 %v1737_v55 }
 0x178   :  { %v1672_v0 = vpop.permute.xlu1 %1671 }
 0x179   :  { %v1736_v10 = vsel %vm1731_vm5, %v1672_v0, %v1674_v53  ;;  %v759_v11 = vpop.permute.xlu0 %758 }
 0x17a   :  { %v815_v58 = vsel %vm806_vm4, %v759_v11, %v761_v50  ;;  %1902 = vrot.lane.b32.xlu1 %v3616_v13, %s2858_s19  ;;  %1794 = vmatpush1.bf16.msra.mxu0 %v1736_v10  ;;  %v3827_v50 = vld [vmem:[%s4252_s0 + $0x7c] ss:$12 sps:$4 sm:$0xff]  }
 0x17b   :  { %1900 = vrot.lane.b32.xlu0 %v3624_v39, %s2858_s19  ;;  %873 = vmatpush1.bf16.msra.mxu1 %v815_v58  ;;  %v3843_v58 = vld [vmem:[%s4252_s0 + $0x78] ss:$12 sps:$4 sm:$0xff]  }
 0x17c   :  { %v769_v59 = vpop.permute.xlu1 %768 }
 0x17d   :  { %v767_v8 = vpop.permute.xlu0 %766 }
 0x17e   :  { %1898 = vrot.lane.b32.xlu1 %v3662_v20, %s2858_s19  ;;  %v818_v32 = vsel %vm806_vm4, %v767_v8, %v769_v59 }
 0x17f   :  { %966 = vrot.lane.b32.xlu0 %v3750_v60, %s2857_s9  ;;  %874 = vmatprep.subr.bf16.mxu1 %v818_v32  ;;  %v3850_v32 = vld [vmem:[%s4252_s0 + $0x98] ss:$12 sps:$4 sm:$0xff]  }
 0x180   :  { %v1682_v61 = vpop.permute.xlu1 %1681 }
 0x181   :  { %v1680_v62 = vpop.permute.xlu0 %1679 }
 0x182   :  { %976 = vrot.lane.b32.xlu1 %v3757_v63, %s2857_s9  ;;  %v1739_v33 = vsel %vm1731_vm5, %v1680_v62, %v1682_v61 }
 0x183   :  { %974 = vrot.lane.b32.xlu0 %v3765_v34, %s2857_s9  ;;  %1795 = vmatprep.subr.bf16.mxu0 %v1739_v33 }
 0x184   :  { %v1678_v37 = vpop.permute.xlu1 %1677 }
 0x185   :  { %v1738_v4 = vsel %vm1731_vm5, %v1678_v37, %v1680_v62  ;;  %v765_v12 = vpop.permute.xlu0 %764  ;;  %v3858_v62 = vld [vmem:[%s4252_s0 + $0x94] ss:$12 sps:$4 sm:$0xff]  }
 0x186   :  { %v817_v38 = vsel %vm806_vm4, %v765_v12, %v767_v8  ;;  %1908 = vrot.lane.b32.xlu1 %v3675_v21, %s2858_s19  ;;  %1796 = vmatpush1.bf16.msra.mxu0 %v1738_v4 }
 0x187   :  { %1906 = vrot.lane.b32.xlu0 %v3684_v18, %s2858_s19  ;;  %875 = vmatpush1.bf16.msra.mxu1 %v817_v38 }
 0x188   :  { %v775_v3 = vpop.permute.xlu1 %774 }
 0x189   :  { %v773_v45 = vpop.permute.xlu0 %772 }
 0x18a   :  { %1904 = vrot.lane.b32.xlu1 %v3719_v52, %s2858_s19  ;;  %v820_v40 = vsel %vm806_vm4, %v773_v45, %v775_v3 }
 0x18b   :  { %972 = vrot.lane.b32.xlu0 %v3781_v41, %s2857_s9  ;;  %876 = vmatprep.subr.bf16.mxu1 %v820_v40  ;;  %v3874_v40 = vld [vmem:[%s4252_s0 + $0x90] ss:$12 sps:$4 sm:$0xff]  }
 0x18c   :  { %v1688_v1 = vpop.permute.xlu1 %1687 }
 0x18d   :  { %v1686_v42 = vpop.permute.xlu0 %1685 }
 0x18e   :  { %982 = vrot.lane.b32.xlu1 %v3788_v16, %s2857_s9  ;;  %v1741_v43 = vsel %vm1731_vm5, %v1686_v42, %v1688_v1 }
 0x18f   :  { %980 = vrot.lane.b32.xlu0 %v3796_v2, %s2857_s9  ;;  %1797 = vmatprep.subr.bf16.mxu0 %v1741_v43  ;;  %v3881_v43 = vld [vmem:[%s4252_s0 + $0xb0] ss:$12 sps:$4 sm:$0xff]  }
 0x190   :  { %v1684_v44 = vpop.permute.xlu1 %1683 }
 0x191   :  { %v1740_v46 = vsel %vm1731_vm5, %v1684_v44, %v1686_v42  ;;  %v771_v27 = vpop.permute.xlu0 %770 }
 0x192   :  { %v819_v24 = vsel %vm806_vm4, %v771_v27, %v773_v45  ;;  %1914 = vrot.lane.b32.xlu1 %v3726_v30, %s2858_s19  ;;  %1798 = vmatpush1.bf16.msra.mxu0 %v1740_v46  ;;  %v3889_v46 = vld [vmem:[%s4252_s0 + $0xac] ss:$12 sps:$4 sm:$0xff]  }
 0x193   :  { %1912 = vrot.lane.b32.xlu0 %v3734_v56, %s2858_s19  ;;  %877 = vmatpush1.bf16.msra.mxu1 %v819_v24 }
 0x194   :  { %v781_v9 = vpop.permute.xlu1 %780 }
 0x195   :  { %v779_v6 = vpop.permute.xlu0 %778 }
 0x196   :  { %1910 = vrot.lane.b32.xlu1 %v3750_v60, %s2858_s19  ;;  %v822_v19 = vsel %vm806_vm4, %v779_v6, %v781_v9 }
 0x197   :  { %978 = vrot.lane.b32.xlu0 %v3812_v47, %s2857_s9  ;;  %878 = vmatprep.subr.bf16.mxu1 %v822_v19 }
 0x198   :  { %v1694_v25 = vpop.permute.xlu1 %1693 }
 0x199   :  { %v1692_v28 = vpop.permute.xlu0 %1691 }
 0x19a   :  { %988 = vrot.lane.b32.xlu1 %v3819_v23, %s2857_s9  ;;  %v1743_v49 = vsel %vm1731_vm5, %v1692_v28, %v1694_v25 }
 0x19b   :  { %986 = vrot.lane.b32.xlu0 %v3827_v50, %s2857_s9  ;;  %1799 = vmatprep.subr.bf16.mxu0 %v1743_v49 }
 0x19c   :  { %v1690_v51 = vpop.permute.xlu1 %1689 }
 0x19d   :  { %v1742_v26 = vsel %vm1731_vm5, %v1690_v51, %v1692_v28  ;;  %v777_v53 = vpop.permute.xlu0 %776 }
 0x19e   :  { %v821_v55 = vsel %vm806_vm4, %v777_v53, %v779_v6  ;;  %1920 = vrot.lane.b32.xlu1 %v3757_v63, %s2858_s19  ;;  %1800 = vmatpush1.bf16.msra.mxu0 %v1742_v26 }
 0x19f   :  { %1918 = vrot.lane.b32.xlu0 %v3765_v34, %s2858_s19  ;;  %879 = vmatpush1.bf16.msra.mxu1 %v821_v55 }
 0x1a0   :  { %v787_v0 = vpop.permute.xlu1 %786 }
 0x1a1   :  { %v785_v10 = vpop.permute.xlu0 %784 }
 0x1a2   :  { %1916 = vrot.lane.b32.xlu1 %v3781_v41, %s2858_s19  ;;  %v824_v11 = vsel %vm806_vm4, %v785_v10, %v787_v0 }
 0x1a3   :  { %984 = vrot.lane.b32.xlu0 %v3843_v58, %s2857_s9  ;;  %880 = vmatprep.subr.bf16.mxu1 %v824_v11 }
 0x1a4   :  { %v1700_v59 = vpop.permute.xlu1 %1699 }
 0x1a5   :  { %v1698_v8 = vpop.permute.xlu0 %1697 }
 0x1a6   :  { %994 = vrot.lane.b32.xlu1 %v3850_v32, %s2857_s9  ;;  %v1745_v61 = vsel %vm1731_vm5, %v1698_v8, %v1700_v59 }
 0x1a7   :  { %992 = vrot.lane.b32.xlu0 %v3858_v62, %s2857_s9  ;;  %1801 = vmatprep.subr.bf16.mxu0 %v1745_v61 }
 0x1a8   :  { %v1696_v33 = vpop.permute.xlu1 %1695 }
 0x1a9   :  { %v1744_v37 = vsel %vm1731_vm5, %v1696_v33, %v1698_v8  ;;  %v783_v4 = vpop.permute.xlu0 %782 }
 0x1aa   :  { %v823_v12 = vsel %vm806_vm4, %v783_v4, %v785_v10  ;;  %1926 = vrot.lane.b32.xlu1 %v3788_v16, %s2858_s19  ;;  %1802 = vmatpush1.bf16.msra.mxu0 %v1744_v37 }
 0x1ab   :  { %1924 = vrot.lane.b32.xlu0 %v3796_v2, %s2858_s19  ;;  %881 = vmatpush1.bf16.msra.mxu1 %v823_v12 }
 0x1ac   :  { %v793_v38 = vpop.permute.xlu1 %792 }
 0x1ad   :  { %v791_v3 = vpop.permute.xlu0 %790 }
 0x1ae   :  { %1922 = vrot.lane.b32.xlu1 %v3812_v47, %s2858_s19  ;;  %v826_v45 = vsel %vm806_vm4, %v791_v3, %v793_v38 }
 0x1af   :  { %990 = vrot.lane.b32.xlu0 %v3874_v40, %s2857_s9  ;;  %882 = vmatprep.subr.bf16.mxu1 %v826_v45  ;;  %v2765_v45 = vld [vmem:[%s4253_s1 + $0x90] ss:$8 sps:$4 sm:$0xff]  }
 0x1b0   :  { %v1706_v1 = vpop.permute.xlu1 %1705 }
 0x1b1   :  { %v1704_v42 = vpop.permute.xlu0 %1703 }
 0x1b2   :  { %1000 = vrot.lane.b32.xlu1 %v3881_v43, %s2857_s9  ;;  %v1747_v44 = vsel %vm1731_vm5, %v1704_v42, %v1706_v1 }
 0x1b3   :  { %998 = vrot.lane.b32.xlu0 %v3889_v46, %s2857_s9  ;;  %1803 = vmatprep.subr.bf16.mxu0 %v1747_v44 }
 0x1b4   :  { %v1702_v27 = vpop.permute.xlu1 %1701 }
 0x1b5   :  { %v1746_v24 = vsel %vm1731_vm5, %v1702_v27, %v1704_v42  ;;  %v789_v9 = vpop.permute.xlu0 %788  ;;  %v2777_v42 = vld [vmem:[%s4253_s1 + $0xa4] ss:$8 sps:$4 sm:$0xff]  }
 0x1b6   :  { %v825_v6 = vsel %vm806_vm4, %v789_v9, %v791_v3  ;;  %1932 = vrot.lane.b32.xlu1 %v3819_v23, %s2858_s19  ;;  %1804 = vmatpush1.bf16.msra.mxu0 %v1746_v24 }
 0x1b7   :  { %1930 = vrot.lane.b32.xlu0 %v3827_v50, %s2858_s19  ;;  %883 = vmatpush1.bf16.msra.mxu1 %v825_v6 }
 0x1b8   :  { %v799_v19 = vpop.permute.xlu1 %798 }
 0x1b9   :  { %v797_v25 = vpop.permute.xlu0 %796 }
 0x1ba   :  { %1928 = vrot.lane.b32.xlu1 %v3843_v58, %s2858_s19  ;;  %v828_v28 = vsel %vm806_vm4, %v797_v25, %v799_v19 }
 0x1bb   :  { %996 = vrot.lane.b32.xlu0 %v3523_v29, %s2857_s9  ;;  %884 = vmatprep.subr.bf16.mxu1 %v828_v28 }
 0x1bc   :  { %v1712_v49 = vpop.permute.xlu1 %1711 }
 0x1bd   :  { %v1710_v51 = vpop.permute.xlu0 %1709 }
 0x1be   :  { %1006 = vrot.lane.b32.xlu1 %v3546_v54, %s2857_s9  ;;  %v1749_v26 = vsel %vm1731_vm5, %v1710_v51, %v1712_v49 }
 0x1bf   :  { %1004 = vrot.lane.b32.xlu0 %v3553_v31, %s2857_s9  ;;  %1805 = vmatprep.subr.bf16.mxu0 %v1749_v26 }
 0x1c0   :  { %v1708_v53 = vpop.permute.xlu1 %1707 }
 0x1c1   :  { %v1748_v55 = vsel %vm1731_vm5, %v1708_v53, %v1710_v51  ;;  %v795_v0 = vpop.permute.xlu0 %794  ;;  %v2780_v51 = vld [vmem:[%s4253_s1 + $0xb4] ss:$8 sps:$4 sm:$0xff]  }
 0x1c2   :  { %v827_v10 = vsel %vm806_vm4, %v795_v0, %v797_v25  ;;  %1938 = vrot.lane.b32.xlu1 %v3850_v32, %s2858_s19  ;;  %1806 = vmatpush1.bf16.msra.mxu0 %v1748_v55  ;;  %v2779_v25 = vld [vmem:[%s4253_s1 + $0xa0] ss:$8 sps:$4 sm:$0xff]  }
 0x1c3   :  { %1936 = vrot.lane.b32.xlu0 %v3858_v62, %s2858_s19  ;;  %885 = vmatpush1.bf16.msra.mxu1 %v827_v10 }
 0x1c4   :  { %v805_v11 = vpop.permute.xlu1 %804 }
 0x1c5   :  { %v803_v59 = vpop.permute.xlu0 %802 }
 0x1c6   :  { %1934 = vrot.lane.b32.xlu1 %v3874_v40, %s2858_s19  ;;  %v830_v8 = vsel %vm806_vm4, %v803_v59, %v805_v11  ;;  %v2782_v11 = vld [vmem:[%s4253_s1 + $0xb0] ss:$8 sps:$4 sm:$0xff]  }
 0x1c7   :  { %1002 = vrot.lane.b32.xlu0 %v3561_v57, %s2857_s9  ;;  %886 = vmatprep.subr.bf16.mxu1 %v830_v8  ;;  %v2785_v8 = vld [vmem:[%s4253_s1 + $0x34] ss:$8 sps:$4 sm:$0xff]  }
 0x1c8   :  { %v1718_v61 = vpop.permute.xlu1 %1717 }
 0x1c9   :  { %v1716_v33 = vpop.permute.xlu0 %1715 }
 0x1ca   :  { %1012 = vrot.lane.b32.xlu1 %v3588_v35, %s2857_s9  ;;  %v1751_v37 = vsel %vm1731_vm5, %v1716_v33, %v1718_v61 }
 0x1cb   :  { %1010 = vrot.lane.b32.xlu0 %v3595_v36, %s2857_s9  ;;  %1807 = vmatprep.subr.bf16.mxu0 %v1751_v37 }
 0x1cc   :  { %v1714_v4 = vpop.permute.xlu1 %1713 }
 0x1cd   :  { %v1750_v12 = vsel %vm1731_vm5, %v1714_v4, %v1716_v33  ;;  %v801_v38 = vpop.permute.xlu0 %800 }
 0x1ce   :  { %v829_v3 = vsel %vm806_vm4, %v801_v38, %v803_v59  ;;  %1944 = vrot.lane.b32.xlu1 %v3881_v43, %s2858_s19  ;;  %1808 = vmatpush1.bf16.msra.mxu0 %v1750_v12  ;;  %v2774_v12 = vld [vmem:[%s4253_s1 + $0x120] ss:$8 sps:$4 sm:$0xff]  }
 0x1cf   :  { %1942 = vrot.lane.b32.xlu0 %v3889_v46, %s2858_s19  ;;  %887 = vmatpush1.bf16.msra.mxu1 %v829_v3  ;;  %v2786_v3 = vld [vmem:[%s4253_s1 + $0x134] ss:$8 sps:$4 sm:$0xff]  }
 0x1d0   :  { %v959_v1 = vpop.permute.xlu1 %958 }
 0x1d1   :  { %v957_v44 = vpop.permute.xlu0 %956 }
 0x1d2   :  { %1940 = vrot.lane.b32.xlu1 %v3523_v29, %s2858_s19  ;;  %v1028_v27 = vsel %vm1026_vm6, %v957_v44, %v959_v1  ;;  %897 = vmatmul.mubr.bf16.vlgmr.msra.gmra.mrb[0].mxu1 %v2765_v45 }
 0x1d3   :  { %1008 = vrot.lane.b32.xlu0 %v3605_v15, %s2857_s9  ;;  %1084 = vmatprep.subr.bf16.mxu1 %v1028_v27 }
 0x1d4   :  { %v1724_v24 = vpop.permute.xlu1 %1723  ;;  %2473 = vmatprep.mubr.msk.bf16.mxu1 %vm408_vm1, %v2777_v42 }
 0x1d5   :  { %v1722_v9 = vpop.permute.xlu0 %1721 }
 0x1d6   :  { %1018 = vrot.lane.b32.xlu1 %v3639_v17, %s2857_s9  ;;  %v1753_v6 = vsel %vm1731_vm5, %v1722_v9, %v1724_v24  ;;  %v2791_v24 = vld [vmem:[%s4253_s1 + $0x130] ss:$8 sps:$4 sm:$0xff]  }
 0x1d7   :  { %1016 = vrot.lane.b32.xlu0 %v3646_v5, %s2857_s9  ;;  %1809 = vmatprep.subr.bf16.mxu0 %v1753_v6 }
 0x1d8   :  { %v1720_v19 = vpop.permute.xlu1 %1719 }
 0x1d9   :  { %v1752_v28 = vsel %vm1731_vm5, %v1720_v19, %v1722_v9  ;;  %v955_v49 = vpop.permute.xlu0 %954  ;;  %v2792_v19 = vld [vmem:[%s4253_s1 + $0x144] ss:$8 sps:$4 sm:$0xff]  }
 0x1da   :  { %v1027_v26 = vsel %vm1026_vm6, %v955_v49, %v957_v44  ;;  %1950 = vrot.lane.b32.xlu1 %v3546_v54, %s2858_s19  ;;  %1810 = vmatpush1.bf16.msra.mxu0 %v1752_v28 }
 0x1db   :  { %1948 = vrot.lane.b32.xlu0 %v3553_v31, %s2858_s19  ;;  %1085 = vmatpush1.bf16.msra.mxu1 %v1027_v26 }
 0x1dc   :  { %v965_v53 = vpop.permute.xlu1 %964  ;;  %907 = vmatmul.mubr.bf16.gmra.mrb[4].mxu1 %v2779_v25 }
 0x1dd   :  { %v963_v55 = vpop.permute.xlu0 %962  ;;  %2474 = vmatprep.mubr.msk.bf16.mxu1 %vm408_vm1, %v2780_v51 }
 0x1de   :  { %1946 = vrot.lane.b32.xlu1 %v3561_v57, %s2858_s19  ;;  %v1030_v0 = vsel %vm1026_vm6, %v963_v55, %v965_v53  ;;  %v2797_v53 = vld [vmem:[%s4253_s1 + $0x140] ss:$8 sps:$4 sm:$0xff]  }
 0x1df   :  { %1014 = vrot.lane.b32.xlu0 %v3654_v14, %s2857_s9  ;;  %1086 = vmatprep.subr.bf16.mxu1 %v1030_v0 }
 0x1e0   :  { %v1730_v10 = vpop.permute.xlu1 %1729 }
 0x1e1   :  { %v1728_v59 = vpop.permute.xlu0 %1727 }
 0x1e2   :  { %1024 = vrot.lane.b32.xlu1 %v3693_v48, %s2857_s9  ;;  %v1755_v61 = vsel %vm1731_vm5, %v1728_v59, %v1730_v10 }
 0x1e3   :  { %1022 = vrot.lane.b32.xlu0 %v3700_v22, %s2857_s9  ;;  %1811 = vmatprep.subr.bf16.mxu0 %v1755_v61 }
 0x1e4   :  { %v1726_v33 = vpop.permute.xlu1 %1725  ;;  %917 = vmatmul.mubr.bf16.gmra.mrb[8].mxu1 %v2782_v11 }
 0x1e5   :  { %v1754_v37 = vsel %vm1731_vm5, %v1726_v33, %v1728_v59  ;;  %v961_v4 = vpop.permute.xlu0 %960  ;;  %2481 = vmatprep.mubr.msk.bf16.mxu1 %vm408_vm1, %v2785_v8 }
 0x1e6   :  { %v1029_v38 = vsel %vm1026_vm6, %v961_v4, %v963_v55  ;;  %1956 = vrot.lane.b32.xlu1 %v3588_v35, %s2858_s19  ;;  %1812 = vmatpush1.bf16.msra.mxu0 %v1754_v37 }
 0x1e7   :  { %1954 = vrot.lane.b32.xlu0 %v3595_v36, %s2858_s19  ;;  %1087 = vmatpush1.bf16.msra.mxu1 %v1029_v38 }
 0x1e8   :  { %v971_v45 = vpop.permute.xlu1 %970 }
 0x1e9   :  { %v969_v1 = vpop.permute.xlu0 %968  ;;  %1822 = vmatmul.mubr.bf16.vlgmr.msra.gmra.mrb[0].mxu0 %v2774_v12 }
 0x1ea   :  { %1952 = vrot.lane.b32.xlu1 %v3605_v15, %s2858_s19  ;;  %v1032_v42 = vsel %vm1026_vm6, %v969_v1, %v971_v45  ;;  %2527 = vmatprep.mubr.msk.bf16.mxu0 %vm408_vm1, %v2786_v3 }
 0x1eb   :  { %1020 = vrot.lane.b32.xlu0 %v3710_v7, %s2857_s9  ;;  %1088 = vmatprep.subr.bf16.mxu1 %v1032_v42 }
 0x1ec   :  { %v1903_v44 = vpop.permute.xlu1 %1902 }
 0x1ed   :  { %v1901_v27 = vpop.permute.xlu0 %1900 }
 0x1ee   :  { %1962 = vrot.lane.b32.xlu1 %v3639_v17, %s2858_s19  ;;  %v1972_v9 = vsel %vm1970_vm7, %v1901_v27, %v1903_v44 }
 0x1ef   :  { %1960 = vrot.lane.b32.xlu0 %v3646_v5, %s2858_s19  ;;  %2028 = vmatprep.subr.bf16.mxu0 %v1972_v9 }
 0x1f0   :  { %v1899_v6 = vpop.permute.xlu1 %1898 }
 0x1f1   :  { %v1971_v25 = vsel %vm1970_vm7, %v1899_v6, %v1901_v27  ;;  %v967_v28 = vpop.permute.xlu0 %966  ;;  %1832 = vmatmul.mubr.bf16.gmra.mrb[4].mxu0 %v2791_v24 }
 0x1f2   :  { %v1031_v49 = vsel %vm1026_vm6, %v967_v28, %v969_v1  ;;  %2141 = vrot.lane.b32.xlu1 %v3616_v13, %s2859_s16  ;;  %2029 = vmatpush1.bf16.msra.mxu0 %v1971_v25  ;;  %v2800_v13 = vld [vmem:[%s4253_s1 + $0x154] ss:$8 sps:$4 sm:$0xff]  }
 0x1f3   :  { %2139 = vrot.lane.b32.xlu0 %v3624_v39, %s2859_s16  ;;  %1089 = vmatpush1.bf16.msra.mxu1 %v1031_v49 }
 0x1f4   :  { %v977_v51 = vpop.permute.xlu1 %976  ;;  %2528 = vmatprep.mubr.msk.bf16.mxu0 %vm408_vm1, %v2792_v19 }
 0x1f5   :  { %v975_v26 = vpop.permute.xlu0 %974 }
 0x1f6   :  { %2137 = vrot.lane.b32.xlu1 %v3662_v20, %s2859_s16  ;;  %v1034_v55 = vsel %vm1026_vm6, %v975_v26, %v977_v51 }
 0x1f7   :  { %1958 = vrot.lane.b32.xlu0 %v3654_v14, %s2858_s19  ;;  %1090 = vmatprep.subr.bf16.mxu1 %v1034_v55 }
 0x1f8   :  { %v1909_v39 = vpop.permute.xlu1 %1908 }
 0x1f9   :  { %v1907_v0 = vpop.permute.xlu0 %1906  ;;  %1842 = vmatmul.mubr.bf16.gmra.mrb[8].mxu0 %v2797_v53 }
 0x1fa   :  { %1968 = vrot.lane.b32.xlu1 %v3693_v48, %s2858_s19  ;;  %v1974_v10 = vsel %vm1970_vm7, %v1907_v0, %v1909_v39  ;;  %2541 = vmatprep.mubr.msk.bf16.mxu0 %vm408_vm1, %v2800_v13 }
 0x1fb   :  { %1966 = vrot.lane.b32.xlu0 %v3700_v22, %s2858_s19  ;;  %2030 = vmatprep.subr.bf16.mxu0 %v1974_v10 }
 0x1fc   :  { %v1905_v20 = vpop.permute.xlu1 %1904 }
 0x1fd   :  { %v1973_v11 = vsel %vm1970_vm7, %v1905_v20, %v1907_v0  ;;  %v973_v59 = vpop.permute.xlu0 %972 }
 0x1fe   :  { %v1033_v8 = vsel %vm1026_vm6, %v973_v59, %v975_v26  ;;  %2147 = vrot.lane.b32.xlu1 %v3675_v21, %s2859_s16  ;;  %2031 = vmatpush1.bf16.msra.mxu0 %v1973_v11 }
 0x1ff   :  { %2145 = vrot.lane.b32.xlu0 %v3684_v18, %s2859_s16  ;;  %1091 = vmatpush1.bf16.msra.mxu1 %v1033_v8 }
 0x200   :  { %v983_v61 = vpop.permute.xlu1 %982 }
 0x201   :  { %v981_v33 = vpop.permute.xlu0 %980 }
 0x202   :  { %2143 = vrot.lane.b32.xlu1 %v3719_v52, %s2859_s16  ;;  %v1036_v37 = vsel %vm1026_vm6, %v981_v33, %v983_v61 }
 0x203   :  { %1964 = vrot.lane.b32.xlu0 %v3710_v7, %s2858_s19  ;;  %1092 = vmatprep.subr.bf16.mxu1 %v1036_v37 }
 0x204   :  { %v1915_v4 = vpop.permute.xlu1 %1914 }
 0x205   :  { %v1913_v12 = vpop.permute.xlu0 %1912 }
 0x206   :  { %2153 = vrot.lane.b32.xlu1 %v3726_v30, %s2859_s16  ;;  %v1976_v21 = vsel %vm1970_vm7, %v1913_v12, %v1915_v4 }
 0x207   :  { %2151 = vrot.lane.b32.xlu0 %v3734_v56, %s2859_s16  ;;  %2032 = vmatprep.subr.bf16.mxu0 %v1976_v21 }
 0x208   :  { %v1911_v18 = vpop.permute.xlu1 %1910 }
 0x209   :  { %v1975_v52 = vsel %vm1970_vm7, %v1911_v18, %v1913_v12  ;;  %v979_v38 = vpop.permute.xlu0 %978 }
 0x20a   :  { %v1035_v3 = vsel %vm1026_vm6, %v979_v38, %v981_v33  ;;  %2157 = vrot.lane.b32.xlu1 %v3765_v34, %s2859_s16  ;;  %2033 = vmatpush1.bf16.msra.mxu0 %v1975_v52 }
 0x20b   :  { %2149 = vrot.lane.b32.xlu0 %v3750_v60, %s2859_s16  ;;  %1093 = vmatpush1.bf16.msra.mxu1 %v1035_v3 }
 0x20c   :  { %v989_v30 = vpop.permute.xlu1 %988 }
 0x20d   :  { %v987_v45 = vpop.permute.xlu0 %986 }
 0x20e   :  { %2155 = vrot.lane.b32.xlu1 %v3781_v41, %s2859_s16  ;;  %v1038_v56 = vsel %vm1026_vm6, %v987_v45, %v989_v30 }
 0x20f   :  { %2159 = vrot.lane.b32.xlu0 %v3757_v63, %s2859_s16  ;;  %1094 = vmatprep.subr.bf16.mxu1 %v1038_v56 }
 0x210   :  { %v1921_v1 = vpop.permute.xlu1 %1920 }
 0x211   :  { %v1919_v42 = vpop.permute.xlu0 %1918 }
 0x212   :  { %2165 = vrot.lane.b32.xlu1 %v3788_v16, %s2859_s16  ;;  %v1978_v34 = vsel %vm1970_vm7, %v1919_v42, %v1921_v1 }
 0x213   :  { %2163 = vrot.lane.b32.xlu0 %v3796_v2, %s2859_s16  ;;  %2034 = vmatprep.subr.bf16.mxu0 %v1978_v34 }
 0x214   :  { %v1917_v60 = vpop.permute.xlu1 %1916 }
 0x215   :  { %v1977_v41 = vsel %vm1970_vm7, %v1917_v60, %v1919_v42  ;;  %v985_v44 = vpop.permute.xlu0 %984  ;;  %v2783_v60 = vld [vmem:[%s4253_s1 + $0x30] ss:$8 sps:$4 sm:$0xff]  }
 0x216   :  { %v1037_v27 = vsel %vm1026_vm6, %v985_v44, %v987_v45  ;;  %2169 = vrot.lane.b32.xlu1 %v3827_v50, %s2859_s16  ;;  %2035 = vmatpush1.bf16.msra.mxu0 %v1977_v41  ;;  %v2788_v41 = vld [vmem:[%s4253_s1 + $0x44] ss:$8 sps:$4 sm:$0xff]  }
 0x217   :  { %2161 = vrot.lane.b32.xlu0 %v3812_v47, %s2859_s16  ;;  %1095 = vmatpush1.bf16.msra.mxu1 %v1037_v27 }
 0x218   :  { %v995_v63 = vpop.permute.xlu1 %994 }
 0x219   :  { %v993_v16 = vpop.permute.xlu0 %992 }
 0x21a   :  { %2167 = vrot.lane.b32.xlu1 %v3843_v58, %s2859_s16  ;;  %v1040_v2 = vsel %vm1026_vm6, %v993_v16, %v995_v63 }
 0x21b   :  { %2171 = vrot.lane.b32.xlu0 %v3819_v23, %s2859_s16  ;;  %1096 = vmatprep.subr.bf16.mxu1 %v1040_v2 }
 0x21c   :  { %v1927_v24 = vpop.permute.xlu1 %1926 }
 0x21d   :  { %v1925_v9 = vpop.permute.xlu0 %1924 }
 0x21e   :  { %2177 = vrot.lane.b32.xlu1 %v3850_v32, %s2859_s16  ;;  %v1980_v50 = vsel %vm1970_vm7, %v1925_v9, %v1927_v24 }
 0x21f   :  { %2175 = vrot.lane.b32.xlu0 %v3858_v62, %s2859_s16  ;;  %2036 = vmatprep.subr.bf16.mxu0 %v1980_v50 }
 0x220   :  { %v1923_v47 = vpop.permute.xlu1 %1922 }
 0x221   :  { %v1979_v58 = vsel %vm1970_vm7, %v1923_v47, %v1925_v9  ;;  %v991_v6 = vpop.permute.xlu0 %990  ;;  %v2790_v9 = vld [vmem:[%s4253_s1 + $0x40] ss:$8 sps:$4 sm:$0xff]   ;;  %v2794_v47 = vld [vmem:[%s4253_s1 + $0x54] ss:$8 sps:$4 sm:$0xff]  }
 0x222   :  { %v1039_v19 = vsel %vm1026_vm6, %v991_v6, %v993_v16  ;;  %2181 = vrot.lane.b32.xlu1 %v3889_v46, %s2859_s16  ;;  %2037 = vmatpush1.bf16.msra.mxu0 %v1979_v58 }
 0x223   :  { %2173 = vrot.lane.b32.xlu0 %v3874_v40, %s2859_s16  ;;  %1097 = vmatpush1.bf16.msra.mxu1 %v1039_v19 }
 0x224   :  { %v1001_v23 = vpop.permute.xlu1 %1000 }
 0x225   :  { %v999_v32 = vpop.permute.xlu0 %998 }
 0x226   :  { %2179 = vrot.lane.b32.xlu1 %v3523_v29, %s2859_s16  ;;  %v1042_v62 = vsel %vm1026_vm6, %v999_v32, %v1001_v23 }
 0x227   :  { %2183 = vrot.lane.b32.xlu0 %v3881_v43, %s2859_s16  ;;  %1098 = vmatprep.subr.bf16.mxu1 %v1042_v62 }
 0x228   :  { %v1933_v25 = vpop.permute.xlu1 %1932 }
 0x229   :  { %v1931_v28 = vpop.permute.xlu0 %1930 }
 0x22a   :  { %2189 = vrot.lane.b32.xlu1 %v3546_v54, %s2859_s16  ;;  %v1982_v46 = vsel %vm1970_vm7, %v1931_v28, %v1933_v25  ;;  %v2796_v25 = vld [vmem:[%s4253_s1 + $0x50] ss:$8 sps:$4 sm:$0xff]  }
 0x22b   :  { %2187 = vrot.lane.b32.xlu0 %v3553_v31, %s2859_s16  ;;  %2038 = vmatprep.subr.bf16.mxu0 %v1982_v46 }
 0x22c   :  { %v1929_v40 = vpop.permute.xlu1 %1928 }
 0x22d   :  { %v1981_v29 = vsel %vm1970_vm7, %v1929_v40, %v1931_v28  ;;  %v997_v49 = vpop.permute.xlu0 %996  ;;  %v2812_v28 = vld [vmem:[%s4253_s1 + $0x194] ss:$8 sps:$4 sm:$0xff]  }
 0x22e   :  { %v1041_v51 = vsel %vm1026_vm6, %v997_v49, %v999_v32  ;;  %2193 = vrot.lane.b32.xlu1 %v3595_v36, %s2859_s16  ;;  %2039 = vmatpush1.bf16.msra.mxu0 %v1981_v29 }
 0x22f   :  { %2185 = vrot.lane.b32.xlu0 %v3561_v57, %s2859_s16  ;;  %1099 = vmatpush1.bf16.msra.mxu1 %v1041_v51 }
 0x230   :  { %v1007_v54 = vpop.permute.xlu1 %1006 }
 0x231   :  { %v1005_v43 = vpop.permute.xlu0 %1004 }
 0x232   :  { %2191 = vrot.lane.b32.xlu1 %v3605_v15, %s2859_s16  ;;  %v1044_v31 = vsel %vm1026_vm6, %v1005_v43, %v1007_v54 }
 0x233   :  { %2195 = vrot.lane.b32.xlu0 %v3588_v35, %s2859_s16  ;;  %1100 = vmatprep.subr.bf16.mxu1 %v1044_v31  ;;  %v2798_v31 = vld [vmem:[%s4253_s1 + $0x150] ss:$8 sps:$4 sm:$0xff]  }
 0x234   :  { %v1939_v26 = vpop.permute.xlu1 %1938 }
 0x235   :  { %v1937_v53 = vpop.permute.xlu0 %1936 }
 0x236   :  { %2201 = vrot.lane.b32.xlu1 %v3639_v17, %s2859_s16  ;;  %v1984_v36 = vsel %vm1970_vm7, %v1937_v53, %v1939_v26 }
 0x237   :  { %2199 = vrot.lane.b32.xlu0 %v3646_v5, %s2859_s16  ;;  %2040 = vmatprep.subr.bf16.mxu0 %v1984_v36 }
 0x238   :  { %v1935_v57 = vpop.permute.xlu1 %1934 }
 0x239   :  { %v1983_v15 = vsel %vm1970_vm7, %v1935_v57, %v1937_v53  ;;  %v1003_v55 = vpop.permute.xlu0 %1002  ;;  %v2801_v53 = vld [vmem:[%s4253_s1 + $0x164] ss:$8 sps:$4 sm:$0xff]  }
 0x23a   :  { %v1043_v13 = vsel %vm1026_vm6, %v1003_v55, %v1005_v43  ;;  %2205 = vrot.lane.b32.xlu1 %v3700_v22, %s2859_s16  ;;  %2041 = vmatpush1.bf16.msra.mxu0 %v1983_v15 }
 0x23b   :  { %2197 = vrot.lane.b32.xlu0 %v3654_v14, %s2859_s16  ;;  %1101 = vmatpush1.bf16.msra.mxu1 %v1043_v13 }
 0x23c   :  { %v1013_v35 = vpop.permute.xlu1 %1012 }
 0x23d   :  { %v1011_v17 = vpop.permute.xlu0 %1010 }
 0x23e   :  { %2203 = vrot.lane.b32.xlu1 %v3710_v7, %s2859_s16  ;;  %v1046_v5 = vsel %vm1026_vm6, %v1011_v17, %v1013_v35  ;;  %v2803_v35 = vld [vmem:[%s4253_s1 + $0x160] ss:$8 sps:$4 sm:$0xff]  }
 0x23f   :  { %2207 = vrot.lane.b32.xlu0 %v3693_v48, %s2859_s16  ;;  %1102 = vmatprep.subr.bf16.mxu1 %v1046_v5 }
 0x240   :  { %v1945_v39 = vpop.permute.xlu1 %1944 }
 0x241   :  { %v1943_v0 = vpop.permute.xlu0 %1942 }
 0x242   :  { %v1986_v22 = vsel %vm1970_vm7, %v1943_v0, %v1945_v39 }
 0x243   :  { %2042 = vmatprep.subr.bf16.mxu0 %v1986_v22 }
 0x244   :  { %v1941_v10 = vpop.permute.xlu1 %1940 }
 0x245   :  { %v1985_v14 = vsel %vm1970_vm7, %v1941_v10, %v1943_v0  ;;  %v1009_v20 = vpop.permute.xlu0 %1008  ;;  %v2804_v0 = vld [vmem:[%s4253_s1 + $0x174] ss:$8 sps:$4 sm:$0xff]  }
 0x246   :  { %v1045_v11 = vsel %vm1026_vm6, %v1009_v20, %v1011_v17  ;;  %2043 = vmatpush1.bf16.msra.mxu0 %v1985_v14 }
 0x247   :  { %1103 = vmatpush1.bf16.msra.mxu1 %v1045_v11  ;;  %v2806_v11 = vld [vmem:[%s4253_s1 + $0x170] ss:$8 sps:$4 sm:$0xff]  }
 0x248   :  { %v1019_v7 = vpop.permute.xlu1 %1018 }
 0x249   :  { %v1017_v59 = vpop.permute.xlu0 %1016 }
 0x24a   :  { %v1048_v8 = vsel %vm1026_vm6, %v1017_v59, %v1019_v7 }
 0x24b   :  { %1104 = vmatprep.subr.bf16.mxu1 %v1048_v8 }
 0x24c   :  { %v1951_v48 = vpop.permute.xlu1 %1950 }
 0x24d   :  { %v1949_v61 = vpop.permute.xlu0 %1948 }
 0x24e   :  { %v1988_v33 = vsel %vm1970_vm7, %v1949_v61, %v1951_v48 }
 0x24f   :  { %2044 = vmatprep.subr.bf16.mxu0 %v1988_v33 }
 0x250   :  { %v1947_v37 = vpop.permute.xlu1 %1946 }
 0x251   :  { %v1987_v4 = vsel %vm1970_vm7, %v1947_v37, %v1949_v61  ;;  %v1015_v12 = vpop.permute.xlu0 %1014 }
 0x252   :  { %v1047_v21 = vsel %vm1026_vm6, %v1015_v12, %v1017_v59  ;;  %2045 = vmatpush1.bf16.msra.mxu0 %v1987_v4  ;;  %v2809_v59 = vld [vmem:[%s4253_s1 + $0x184] ss:$8 sps:$4 sm:$0xff]  }
 0x253   :  { %1105 = vmatpush1.bf16.msra.mxu1 %v1047_v21 }
 0x254   :  { %v1025_v18 = vpop.permute.xlu1 %1024 }
 0x255   :  { %v1023_v52 = vpop.permute.xlu0 %1022 }
 0x256   :  { %v1050_v38 = vsel %vm1026_vm6, %v1023_v52, %v1025_v18 }
 0x257   :  { %1106 = vmatprep.subr.bf16.mxu1 %v1050_v38 }
 0x258   :  { %v1957_v3 = vpop.permute.xlu1 %1956 }
 0x259   :  { %v1955_v30 = vpop.permute.xlu0 %1954 }
 0x25a   :  { %v1990_v45 = vsel %vm1970_vm7, %v1955_v30, %v1957_v3 }
 0x25b   :  { %2046 = vmatprep.subr.bf16.mxu0 %v1990_v45 }
 0x25c   :  { %v1953_v56 = vpop.permute.xlu1 %1952 }
 0x25d   :  { %v1989_v1 = vsel %vm1970_vm7, %v1953_v56, %v1955_v30  ;;  %v1021_v42 = vpop.permute.xlu0 %1020 }
 0x25e   :  { %v1049_v34 = vsel %vm1026_vm6, %v1021_v42, %v1023_v52  ;;  %2047 = vmatpush1.bf16.msra.mxu0 %v1989_v1 }
 0x25f   :  { %1107 = vmatpush1.bf16.msra.mxu1 %v1049_v34 }
 0x260   :  { %v1963_v44 = vpop.permute.xlu1 %1962 }
 0x261   :  { %v1961_v27 = vpop.permute.xlu0 %1960 }
 0x262   :  { %1117 = vmatmul.mubr.bf16.vlgmr.msra.gmra.mrb[0].mxu1 %v2783_v60  ;;  %v1992_v63 = vsel %vm1970_vm7, %v1961_v27, %v1963_v44 }
 0x263   :  { %2048 = vmatprep.subr.bf16.mxu0 %v1992_v63  ;;  %2482 = vmatprep.mubr.msk.bf16.mxu1 %vm408_vm1, %v2788_v41 }
 0x264   :  { %v2142_v16 = vpop.permute.xlu1 %2141 }
 0x265   :  { %v2140_v2 = vpop.permute.xlu0 %2139 }
 0x266   :  { %v2211_v24 = vsel %vm2209_vm8, %v2140_v2, %v2142_v16 }
 0x267   :  { %2559 = vmatprep.subr.bf16.mxu1 %v2211_v24 }
 0x268   :  { %v2138_v50 = vpop.permute.xlu1 %2137 }
 0x269   :  { %v2210_v58 = vsel %vm2209_vm8, %v2138_v50, %v2140_v2  ;;  %v1959_v6 = vpop.permute.xlu0 %1958 }
 0x26a   :  { %v1991_v19 = vsel %vm1970_vm7, %v1959_v6, %v1961_v27  ;;  %1127 = vmatmul.mubr.bf16.gmra.mrb[4].mxu1 %v2790_v9 }
 0x26b   :  { %2049 = vmatpush1.bf16.msra.mxu0 %v1991_v19  ;;  %2571 = vmatpush1.bf16.msra.mxu1 %v2210_v58 }
 0x26c   :  { %v1969_v23 = vpop.permute.xlu1 %1968  ;;  %2483 = vmatprep.mubr.msk.bf16.mxu1 %vm408_vm1, %v2794_v47 }
 0x26d   :  { %v1967_v32 = vpop.permute.xlu0 %1966 }
 0x26e   :  { %v1994_v62 = vsel %vm1970_vm7, %v1967_v32, %v1969_v23 }
 0x26f   :  { %2050 = vmatprep.subr.bf16.mxu0 %v1994_v62 }
 0x270   :  { %v2148_v46 = vpop.permute.xlu1 %2147 }
 0x271   :  { %v2146_v40 = vpop.permute.xlu0 %2145 }
 0x272   :  { %1137 = vmatmul.mubr.bf16.gmra.mrb[8].mxu1 %v2796_v25  ;;  %v2213_v29 = vsel %vm2209_vm8, %v2146_v40, %v2148_v46  ;;  %v2810_v46 = vld [vmem:[%s4253_s1 + $0x190] ss:$8 sps:$4 sm:$0xff]  }
 0x273   :  { %2560 = vmatprep.subr.bf16.mxu1 %v2213_v29  ;;  %2557 = vmatprep.mubr.msk.bf16.mxu1 %vm408_vm1, %v2812_v28  ;;  %v2807_v28 = vld [vmem:[%s4253_s1 + $0x180] ss:$8 sps:$4 sm:$0xff]  }
 0x274   :  { %v2144_v49 = vpop.permute.xlu1 %2143 }
 0x275   :  { %v2212_v51 = vsel %vm2209_vm8, %v2144_v49, %v2146_v40  ;;  %v1965_v54 = vpop.permute.xlu0 %1964  ;;  %v2813_v40 = vld [vmem:[%s4253_s1 + $0x1a4] ss:$8 sps:$4 sm:$0xff]  }
 0x276   :  { %v1993_v43 = vsel %vm1970_vm7, %v1965_v54, %v1967_v32  ;;  %2572 = vmatpush1.bf16.msra.mxu1 %v2212_v51 }
 0x277   :  { %2051 = vmatpush1.bf16.msra.mxu0 %v1993_v43 }
 0x278   :  { %2267 = vmatprep.subr.bf16.mxu0 %v2211_v24  ;;  %v2154_v26 = vpop.permute.xlu1 %2153 }
 0x279   :  { %v2152_v36 = vpop.permute.xlu0 %2151 }
 0x27a   :  { %2061 = vmatmul.mubr.bf16.vlgmr.msra.gmra.mrb[0].mxu0 %v2798_v31  ;;  %v2215_v57 = vsel %vm2209_vm8, %v2152_v36, %v2154_v26 }
 0x27b   :  { %2268 = vmatpush1.bf16.msra.mxu0 %v2210_v58  ;;  %2561 = vmatprep.subr.bf16.mxu1 %v2215_v57 }
 0x27c   :  { %2269 = vmatprep.subr.bf16.mxu0 %v2213_v29  ;;  %v2158_v15 = vpop.permute.xlu1 %2157  ;;  %2542 = vmatprep.mubr.msk.bf16.mxu0 %vm408_vm1, %v2801_v53  ;;  %v2815_v29 = vld [vmem:[%s4253_s1 + $0x1a0] ss:$8 sps:$4 sm:$0xff]  }
 0x27d   :  { %v2150_v55 = vpop.permute.xlu0 %2149 }
 0x27e   :  { %v2214_v13 = vsel %vm2209_vm8, %v2150_v55, %v2152_v36 }
 0x27f   :  { %2270 = vmatpush1.bf16.msra.mxu0 %v2212_v51  ;;  %2573 = vmatpush1.bf16.msra.mxu1 %v2214_v13 }
 0x280   :  { %2271 = vmatprep.subr.bf16.mxu0 %v2215_v57  ;;  %v2156_v17 = vpop.permute.xlu1 %2155 }
 0x281   :  { %v2216_v5 = vsel %vm2209_vm8, %v2156_v17, %v2158_v15  ;;  %v2160_v39 = vpop.permute.xlu0 %2159 }
 0x282   :  { %2071 = vmatmul.mubr.bf16.gmra.mrb[4].mxu0 %v2803_v35  ;;  %v2217_v22 = vsel %vm2209_vm8, %v2158_v15, %v2160_v39 }
 0x283   :  { %2272 = vmatpush1.bf16.msra.mxu0 %v2214_v13  ;;  %2562 = vmatprep.subr.bf16.mxu1 %v2217_v22 }
 0x284   :  { %2273 = vmatprep.subr.bf16.mxu0 %v2217_v22  ;;  %2574 = vmatpush1.bf16.msra.mxu1 %v2216_v5  ;;  %v2166_v10 = vpop.permute.xlu1 %2165 }
 0x285   :  { %v2164_v14 = vpop.permute.xlu0 %2163  ;;  %2543 = vmatprep.mubr.msk.bf16.mxu0 %vm408_vm1, %v2804_v0 }
 0x286   :  { %v2219_v20 = vsel %vm2209_vm8, %v2164_v14, %v2166_v10 }
 0x287   :  { %2274 = vmatpush1.bf16.msra.mxu0 %v2216_v5  ;;  %2563 = vmatprep.subr.bf16.mxu1 %v2219_v20 }
 0x288   :  { %2275 = vmatprep.subr.bf16.mxu0 %v2219_v20  ;;  %v2170_v7 = vpop.permute.xlu1 %2169 }
 0x289   :  { %v2162_v8 = vpop.permute.xlu0 %2161 }
 0x28a   :  { %v2218_v48 = vsel %vm2209_vm8, %v2162_v8, %v2164_v14  ;;  %2081 = vmatmul.mubr.bf16.gmra.mrb[8].mxu0 %v2806_v11 }
 0x28b   :  { %2276 = vmatpush1.bf16.msra.mxu0 %v2218_v48  ;;  %2575 = vmatpush1.bf16.msra.mxu1 %v2218_v48 }
 0x28c   :  { %v2168_v61 = vpop.permute.xlu1 %2167  ;;  %2556 = vmatprep.mubr.msk.bf16.mxu0 %vm408_vm1, %v2809_v59 }
 0x28d   :  { %v2220_v33 = vsel %vm2209_vm8, %v2168_v61, %v2170_v7  ;;  %v2172_v37 = vpop.permute.xlu0 %2171 }
 0x28e   :  { %v2221_v4 = vsel %vm2209_vm8, %v2170_v7, %v2172_v37 }
 0x28f   :  { %2277 = vmatprep.subr.bf16.mxu0 %v2221_v4  ;;  %2564 = vmatprep.subr.bf16.mxu1 %v2221_v4 }
 0x290   :  { %2278 = vmatpush1.bf16.msra.mxu0 %v2220_v33  ;;  %2576 = vmatpush1.bf16.msra.mxu1 %v2220_v33  ;;  %v2178_v12 = vpop.permute.xlu1 %2177 }
 0x291   :  { %v2176_v21 = vpop.permute.xlu0 %2175 }
 0x292   :  { %v2223_v18 = vsel %vm2209_vm8, %v2176_v21, %v2178_v12 }
 0x293   :  { %2279 = vmatprep.subr.bf16.mxu0 %v2223_v18  ;;  %2565 = vmatprep.subr.bf16.mxu1 %v2223_v18 }
 0x294   :  { %v2182_v52 = vpop.permute.xlu1 %2181 }
 0x295   :  { %v2174_v38 = vpop.permute.xlu0 %2173 }
 0x296   :  { %v2222_v3 = vsel %vm2209_vm8, %v2174_v38, %v2176_v21 }
 0x297   :  { %2280 = vmatpush1.bf16.msra.mxu0 %v2222_v3  ;;  %2577 = vmatpush1.bf16.msra.mxu1 %v2222_v3 }
 0x298   :  { %v2180_v30 = vpop.permute.xlu1 %2179 }
 0x299   :  { %v2224_v45 = vsel %vm2209_vm8, %v2180_v30, %v2182_v52  ;;  %v2184_v56 = vpop.permute.xlu0 %2183 }
 0x29a   :  { %v2225_v1 = vsel %vm2209_vm8, %v2182_v52, %v2184_v56 }
 0x29b   :  { %2281 = vmatprep.subr.bf16.mxu0 %v2225_v1  ;;  %2566 = vmatprep.subr.bf16.mxu1 %v2225_v1 }
 0x29c   :  { %2282 = vmatpush1.bf16.msra.mxu0 %v2224_v45  ;;  %2578 = vmatpush1.bf16.msra.mxu1 %v2224_v45  ;;  %v2190_v42 = vpop.permute.xlu1 %2189 }
 0x29d   :  { %v2188_v34 = vpop.permute.xlu0 %2187 }
 0x29e   :  { %v2227_v60 = vsel %vm2209_vm8, %v2188_v34, %v2190_v42 }
 0x29f   :  { %2283 = vmatprep.subr.bf16.mxu0 %v2227_v60  ;;  %2567 = vmatprep.subr.bf16.mxu1 %v2227_v60 }
 0x2a0   :  { %v2194_v41 = vpop.permute.xlu1 %2193 }
 0x2a1   :  { %v2186_v44 = vpop.permute.xlu0 %2185 }
 0x2a2   :  { %v2226_v27 = vsel %vm2209_vm8, %v2186_v44, %v2188_v34 }
 0x2a3   :  { %2284 = vmatpush1.bf16.msra.mxu0 %v2226_v27  ;;  %2579 = vmatpush1.bf16.msra.mxu1 %v2226_v27 }
 0x2a4   :  { %v2192_v63 = vpop.permute.xlu1 %2191 }
 0x2a5   :  { %v2228_v16 = vsel %vm2209_vm8, %v2192_v63, %v2194_v41  ;;  %v2196_v2 = vpop.permute.xlu0 %2195 }
 0x2a6   :  { %v2229_v24 = vsel %vm2209_vm8, %v2194_v41, %v2196_v2 }
 0x2a7   :  { %2285 = vmatprep.subr.bf16.mxu0 %v2229_v24  ;;  %2568 = vmatprep.subr.bf16.mxu1 %v2229_v24 }
 0x2a8   :  { %2286 = vmatpush1.bf16.msra.mxu0 %v2228_v16  ;;  %2580 = vmatpush1.bf16.msra.mxu1 %v2228_v16  ;;  %v2202_v9 = vpop.permute.xlu1 %2201 }
 0x2a9   :  { %v2200_v50 = vpop.permute.xlu0 %2199 }
 0x2aa   :  { %v2231_v47 = vsel %vm2209_vm8, %v2200_v50, %v2202_v9 }
 0x2ab   :  { %2287 = vmatprep.subr.bf16.mxu0 %v2231_v47  ;;  %2569 = vmatprep.subr.bf16.mxu1 %v2231_v47 }
 0x2ac   :  { %v2206_v58 = vpop.permute.xlu1 %2205 }
 0x2ad   :  { %v2198_v6 = vpop.permute.xlu0 %2197 }
 0x2ae   :  { %v2230_v19 = vsel %vm2209_vm8, %v2198_v6, %v2200_v50 }
 0x2af   :  { %2288 = vmatpush1.bf16.msra.mxu0 %v2230_v19  ;;  %2581 = vmatpush1.bf16.msra.mxu1 %v2230_v19 }
 0x2b0   :  { %v2204_v23 = vpop.permute.xlu1 %2203 }
 0x2b1   :  { %v2232_v32 = vsel %vm2209_vm8, %v2204_v23, %v2206_v58  ;;  %v2208_v62 = vpop.permute.xlu0 %2207 }
 0x2b2   :  { %v2233_v25 = vsel %vm2209_vm8, %v2206_v58, %v2208_v62 }
 0x2b3   :  { %2289 = vmatprep.subr.bf16.mxu0 %v2233_v25  ;;  %2570 = vmatprep.subr.bf16.mxu1 %v2233_v25 }
 0x2b4   :  { %2290 = vmatpush1.bf16.msra.mxu0 %v2232_v32  ;;  %2582 = vmatpush1.bf16.msra.mxu1 %v2232_v32 }
 0x2b7   :  { %2300 = vmatmul.mubr.bf16.vlgmr.msra.gmra.mrb[0].mxu0 %v2807_v28  ;;  %2310 = vmatmul.mubr.bf16.vlgmr.msra.gmra.mrb[12].mxu1 %v2810_v46 }
 0x2b8   :  { %2558 = vmatprep.mubr.msk.bf16.mxu1 %vm408_vm1, %v2813_v40 }
 0x2bf   :  { %2320 = vmatmul.mubr.bf16.gmra.mrb[16].mxu1 %v2815_v29 }
 0x335   :  { %v1118_v49 = vpop.f32.mrb[0].mxu1 }
 0x336   :  { %v1120_v51 = vpop.f32.mrb[1].mxu1 }
 0x337   :  { %v1122_v54 = vpop.f32.mrb[2].mxu1 }
 0x338   :  { %v1124_v43 = vpop.f32.mrb[3].mxu1 }
 0x33d   :  { %v1128_v31 = vpop.f32.mrb[4].mxu1 }
 0x33e   :  { %v1130_v26 = vpop.f32.mrb[5].mxu1 }
 0x33f   :  { %v1132_v53 = vpop.f32.mrb[6].mxu1 }
 0x340   :  { %v1134_v36 = vpop.f32.mrb[7].mxu1 }
 0x345   :  { %v1138_v57 = vpop.f32.mrb[8].mxu1 }
 0x346   :  { %v1140_v15 = vpop.f32.mrb[9].mxu1 }
 0x347   :  { %v1142_v55 = vpop.f32.mrb[10].mxu1 }
 0x348   :  { %v1144_v13 = vpop.f32.mrb[11].mxu1 }
 0x355   :  { %v2072_v35 = vpop.f32.mrb[4].mxu0 }
 0x356   :  { %v2587_v17 = vadd.f32 %v2072_v35, %v1128_v31  ;;  %v2074_v5 = vpop.f32.mrb[5].mxu0 }
 0x357   :  { %v2589_v39 = vadd.f32 %v2074_v5, %v1130_v26  ;;  %v2076_v0 = vpop.f32.mrb[6].mxu0 }
 0x358   :  { %v2591_v22 = vadd.f32 %v2076_v0, %v1132_v53  ;;  %v2078_v10 = vpop.f32.mrb[7].mxu0 }
 0x359   :  { %v2593_v14 = vadd.f32 %v2078_v10, %v1134_v36 }
 0x35d   :  { %v2082_v20 = vpop.f32.mrb[8].mxu0 }
 0x35e   :  { %v2595_v11 = vadd.f32 %v2082_v20, %v1138_v57  ;;  %v2084_v7 = vpop.f32.mrb[9].mxu0 }
 0x35f   :  { %v2597_v59 = vadd.f32 %v2084_v7, %v1140_v15  ;;  %v2086_v8 = vpop.f32.mrb[10].mxu0 }
 0x360   :  { %v2599_v48 = vadd.f32 %v2086_v8, %v1142_v55  ;;  %v2088_v61 = vpop.f32.mrb[11].mxu0 }
 0x361   :  { %v2601_v33 = vadd.f32 %v2088_v61, %v1144_v13 }
 0x38a   :  { %v2301_v37 = vpop.f32.mrb[0].mxu0  ;;  %v2311_v4 = vpop.f32.mrb[12].mxu1 }
 0x38b   :  { %v2583_v12 = vadd.f32 %v2301_v37, %v1118_v49  ;;  %v2588_v21 = vadd.f32 %v2587_v17, %v2311_v4  ;;  %v2303_v18 = vpop.f32.mrb[1].mxu0  ;;  %v2313_v52 = vpop.f32.mrb[13].mxu1 }
 0x38c   :  { %v2584_v38 = vadd.f32 %v2303_v18, %v1120_v51  ;;  %v2590_v3 = vadd.f32 %v2589_v39, %v2313_v52  ;;  %v2305_v30 = vpop.f32.mrb[2].mxu0  ;;  %v2315_v45 = vpop.f32.mrb[14].mxu1 }
 0x38d   :  { %2354 = vst [vmem:[%s4254_s2] sm:$0xff] %v2583_v12  ;;  %2358 = vst [vmem:[%s4254_s2 + $0x20] sm:$0xff] %v2588_v21  ;;  %v2585_v56 = vadd.f32 %v2305_v30, %v1122_v54  ;;  %v2592_v1 = vadd.f32 %v2591_v22, %v2315_v45  ;;  %v2307_v42 = vpop.f32.mrb[3].mxu0  ;;  %v2317_v34 = vpop.f32.mrb[15].mxu1 }
 0x38e   :  { %2355 = vst [vmem:[%s4254_s2 + $0x8] sm:$0xff] %v2584_v38  ;;  %2359 = vst [vmem:[%s4254_s2 + $0x28] sm:$0xff] %v2590_v3  ;;  %v2586_v60 = vadd.f32 %v2307_v42, %v1124_v43  ;;  %v2594_v41 = vadd.f32 %v2593_v14, %v2317_v34 }
 0x38f   :  { %2356 = vst [vmem:[%s4254_s2 + $0x10] sm:$0xff] %v2585_v56  ;;  %2360 = vst [vmem:[%s4254_s2 + $0x30] sm:$0xff] %v2592_v1 }
 0x390   :  { %2357 = vst [vmem:[%s4254_s2 + $0x18] sm:$0xff] %v2586_v60  ;;  %2361 = vst [vmem:[%s4254_s2 + $0x38] sm:$0xff] %v2594_v41 }
 0x392   :  { %v2321_v44 = vpop.f32.mrb[16].mxu1 }
 0x393   :  { %v2596_v27 = vadd.f32 %v2595_v11, %v2321_v44  ;;  %v2323_v63 = vpop.f32.mrb[17].mxu1 }
 0x394   :  { %v2598_v16 = vadd.f32 %v2597_v59, %v2323_v63  ;;  %v2325_v2 = vpop.f32.mrb[18].mxu1 }
 0x395   :  { %2362 = vst [vmem:[%s4254_s2 + $0x40] sm:$0xff] %v2596_v27  ;;  %v2600_v24 = vadd.f32 %v2599_v48, %v2325_v2  ;;  %v2327_v9 = vpop.f32.mrb[19].mxu1 }
 0x396   :  { %2363 = vst [vmem:[%s4254_s2 + $0x48] sm:$0xff] %v2598_v16  ;;  %v2602_v50 = vadd.f32 %v2601_v33, %v2327_v9 }
 0x397   :  { %2364 = vst [vmem:[%s4254_s2 + $0x50] sm:$0xff] %v2600_v24 }
 0x398   :  { %2365 = vst [vmem:[%s4254_s2 + $0x58] sm:$0xff] %v2602_v50 }

</bundles_post_ra>
